<compile_context>
chip_gen: v6e
topology: v6e:2x2x1
jax: 0.10.0
libtpu: 0.0.40
codegen_flags: <defaults>
</compile_context>

<pallas_src>
from functools import partial

import jax
import jax.numpy as jnp
import numpy as np
from jax import lax
from jax.experimental import pallas as pl
from jax.experimental.pallas import tpu as pltpu


def _avs_kernel(refx_ref, posx_ref, negx_ref, wr_ref, br_ref, wq_ref, bq_ref,
                mask_ref, out_ref, acc_r, acc_p, acc_n,
                *, margin, inv_num_shards, inv_s, t_s, s_true, ragged):
    step = pl.program_id(0)
    n_chunks = t_s // 128

    # --- init accumulators on the first spatial step -----------------------
    @pl.when(step == 0)
    def _init():
        acc_r[...] = jnp.zeros_like(acc_r)
        acc_p[...] = jnp.zeros_like(acc_p)
        acc_n[...] = jnp.zeros_like(acc_n)

    # Validity mask (only materialized when S is not a multiple of t_s):
    # global lane index = step * t_s + lane, valid iff < true S.
    if ragged:
        lane = lax.broadcasted_iota(jnp.int32, (1, 1, t_s), 2)
        valid = (step * t_s + lane) < s_true              # (1, 1, t_s) bool
    else:
        valid = None

    # --- per-step lane-parallel partial sum: (N, C, t_s) -> (N, C, 128) -----
    # Fold the 128-wide lane chunks with plain VPU adds into a register-held
    # partial, then do a single unmasked 128-lane scratch update per stream.
    def fold_block(ref):
        part = None
        for i in range(n_chunks):
            sl = slice(i * 128, (i + 1) * 128)
            chunk = ref[:, :, sl].astype(jnp.float32)
            if ragged:
                chunk = jnp.where(valid[:, :, sl], chunk, 0.0)
            part = chunk if part is None else part + chunk
        return part

    acc_r[...] += fold_block(refx_ref)
    acc_p[...] += fold_block(posx_ref)
    acc_n[...] += fold_block(negx_ref)

    # --- epilogue: XLU reduce, projections, normalize, contrastive loss -----
    @pl.when(step == pl.num_programs(0) - 1)
    def _epilogue():
        ref_m = jnp.sum(acc_r[...], axis=2) * inv_s        # (B, Cr) spatial mean
        pos_m = jnp.sum(acc_p[...], axis=2) * inv_s        # (B, Cq)
        neg_m = jnp.sum(acc_n[...], axis=2) * inv_s        # (B, Cq)

        ref_p = jnp.dot(ref_m, wr_ref[...],
                        preferred_element_type=jnp.float32) + br_ref[...]
        pos_p = jnp.dot(pos_m, wq_ref[...],
                        preferred_element_type=jnp.float32) + bq_ref[...]
        neg_p = jnp.dot(neg_m, wq_ref[...],
                        preferred_element_type=jnp.float32) + bq_ref[...]

        # F.normalize(p=2, dim=1) * 0.5, via rsqrt (EUP slot).
        def l2norm_half(x):
            ss = jnp.sum(x * x, axis=1, keepdims=True)
            return x * lax.rsqrt(jnp.maximum(ss, 1e-24)) * 0.5

        ref_p = l2norm_half(ref_p)                         # (B, P)
        pos_p = l2norm_half(pos_p)                         # (B, P)
        neg_p = l2norm_half(neg_p)                         # (B, P)

        m = mask_ref[...]                                  # (B, 1) audio mask

        pos_sq = jnp.sum((ref_p - pos_p) ** 2, axis=1, keepdims=True)  # (B,1)
        neg_sq = jnp.sum((ref_p - neg_p) ** 2, axis=1, keepdims=True)  # (B,1)

        pos_loss = jnp.sum(m * pos_sq)
        hinge = jnp.maximum(margin - jnp.sqrt(neg_sq), 0.0)
        neg_loss = jnp.sum(m * hinge * hinge)
        n_valid = jnp.sum(m)

        loss = (pos_loss + neg_loss) / (2.0 * n_valid + 1e-8) * inv_num_shards
        out_ref[...] = loss.reshape(1, 1)


def _choose_spatial_tile(s, bytes_per_lane, *, target_bytes=6 << 20,
                         max_lanes=2048):
    """Pick the lane tile over S.

    Always a multiple of 128.  Fast path: if the whole (128-rounded) S range
    fits the per-step byte budget, use a single step.  Otherwise prefer the
    largest multiple-of-128 divisor of S within budget (no ragged tile, no
    in-kernel masking); fall back to the budget-sized tile (ragged last tile
    is masked in-kernel).
    """
    s128 = -(-s // 128) * 128
    budget = max(128, min(max_lanes,
                          (target_bytes // max(int(bytes_per_lane), 1))
                          // 128 * 128))
    if s128 <= budget:
        return s128                        # single-step fast path
    for t in range(budget, 127, -128):     # divisor -> no ragged tile
        if s % t == 0:
            return t
    return budget                          # ragged last tile, masked in-kernel


def avs_forward(ref_x, pos_x, neg_x, audio_mask, params, *, margin=0.99,
                num_shards=1):
    """ref_x: (B, Cr, T, H, W); pos_x/neg_x: (B, Cq, T, H, W); audio_mask: (B,)."""
    w_ref, b_ref, w_query, b_query = params
    B, Cr = ref_x.shape[:2]
    Cq = pos_x.shape[1]
    S = int(np.prod(ref_x.shape[2:]))
    P = w_ref.shape[1]

    # Free, contiguous reshapes; activations stay in their native dtype over
    # HBM (the kernel upcasts to f32 only inside the accumulators).
    refx = ref_x.reshape(B, Cr, S)
    posx = pos_x.reshape(B, Cq, S)
    negx = neg_x.reshape(B, Cq, S)

    bytes_per_lane = (B * Cr * refx.dtype.itemsize
                      + 2 * B * Cq * posx.dtype.itemsize)
    t_s = _choose_spatial_tile(S, bytes_per_lane)
    n_steps = pl.cdiv(S, t_s)
    ragged = (n_steps * t_s != S)

    m = audio_mask.astype(jnp.float32).reshape(B, 1)
    wr = w_ref.astype(jnp.float32)
    wq = w_query.astype(jnp.float32)
    br = b_ref.reshape(1, P).astype(jnp.float32)
    bq = b_query.reshape(1, P).astype(jnp.float32)

    kernel = partial(_avs_kernel, margin=float(margin),
                     inv_num_shards=1.0 / float(num_shards),
                     inv_s=1.0 / float(S), t_s=t_s, s_true=S, ragged=ragged)

    grid_spec = pltpu.PrefetchScalarGridSpec(
        num_scalar_prefetch=0,
        grid=(n_steps,),
        in_specs=[
            # Big streams: tiled over S (lane axis), auto double-buffered.
            # TODO(synk): if profiling shows exposed DMA at large t_s, add
            # pipeline_mode=pl.Buffered(3) on these three specs.
            pl.BlockSpec((B, Cr, t_s), lambda s: (0, 0, s)),
            pl.BlockSpec((B, Cq, t_s), lambda s: (0, 0, s)),
            pl.BlockSpec((B, Cq, t_s), lambda s: (0, 0, s)),
            # Params / mask: constant index_map -> VMEM-resident across steps.
            pl.BlockSpec((Cr, P), lambda s: (0, 0)),
            pl.BlockSpec((1, P), lambda s: (0, 0)),
            pl.BlockSpec((Cq, P), lambda s: (0, 0)),
            pl.BlockSpec((1, P), lambda s: (0, 0)),
            pl.BlockSpec((B, 1), lambda s: (0, 0)),
        ],
        out_specs=pl.BlockSpec((1, 1), lambda s: (0, 0)),
        scratch_shapes=[pltpu.VMEM((B, Cr, 128), jnp.float32),
                        pltpu.VMEM((B, Cq, 128), jnp.float32),
                        pltpu.VMEM((B, Cq, 128), jnp.float32)],
    )

    out = pl.pallas_call(
        kernel,
        out_shape=jax.ShapeDtypeStruct((1, 1), jnp.float32),
        grid_spec=grid_spec,
        compiler_params=pltpu.CompilerParams(
            dimension_semantics=("arbitrary",),        # S is a reduction axis
            vmem_limit_bytes=48 * 1024 * 1024),        # fits v7x (64 MiB) too
    )(refx, posx, negx, wr, br, wq, bq, m)
    return out[0, 0]


def avs_reference(ref_x, pos_x, neg_x, audio_mask, params, *, margin=0.99,
                  num_shards=1):
    """Pure-JAX reference mirroring the PyTorch module (for sanity checking)."""
    w_ref, b_ref, w_query, b_query = params
    ref = jnp.mean(ref_x.astype(jnp.float32), axis=(2, 3, 4))
    pos = jnp.mean(pos_x.astype(jnp.float32), axis=(2, 3, 4))
    neg = jnp.mean(neg_x.astype(jnp.float32), axis=(2, 3, 4))
    ref = ref @ w_ref + b_ref
    pos = pos @ w_query + b_query
    neg = neg @ w_query + b_query

    def norm_half(x):
        n = jnp.linalg.norm(x, axis=1, keepdims=True)
        return x / jnp.maximum(n, 1e-12) * 0.5

    ref, pos, neg = norm_half(ref), norm_half(pos), norm_half(neg)
    m = audio_mask.astype(jnp.float32)
    pos_dist = ref - pos
    neg_dist = ref - neg
    pos_loss = jnp.sum(m[:, None] * pos_dist ** 2)
    neg_norm = jnp.sqrt(jnp.sum(neg_dist ** 2, axis=1))
    neg_loss = jnp.sum(m * jnp.maximum(margin - neg_norm, 0.0) ** 2)
    n_valid = jnp.sum(m)
    return (pos_loss + neg_loss) / (2.0 * n_valid + 1e-8) / float(num_shards)


def _run_case(key, *, B, Cr, Cq, P, T, H, W, num_shards):
    ks = jax.random.split(key, 7)
    ref_x = jax.random.normal(ks[0], (B, Cr, T, H, W), jnp.float32)
    pos_x = jax.random.normal(ks[1], (B, Cq, T, H, W), jnp.float32)
    neg_x = jax.random.normal(ks[2], (B, Cq, T, H, W), jnp.float32)
    audio_mask = (jnp.arange(B) % 4) != 1            # mostly True, >=1 True

    # Deterministic parameter init (stored as (in_dim, out_dim) = nn.Linear W^T).
    w_ref = jax.random.normal(ks[3], (Cr, P), jnp.float32) / np.sqrt(Cr)
    b_ref = jax.random.normal(ks[4], (P,), jnp.float32) * 0.01
    w_query = jax.random.normal(ks[5], (Cq, P), jnp.float32) / np.sqrt(Cq)
    b_query = jax.random.normal(ks[6], (P,), jnp.float32) * 0.01
    params = (w_ref, b_ref, w_query, b_query)

    loss = avs_forward(ref_x, pos_x, neg_x, audio_mask, params,
                       margin=0.99, num_shards=num_shards)
    loss = jax.block_until_ready(loss)
    loss_ref = avs_reference(ref_x, pos_x, neg_x, audio_mask, params,
                             margin=0.99, num_shards=num_shards)
    np.testing.assert_allclose(np.asarray(loss), np.asarray(loss_ref),
                               rtol=2e-4, atol=2e-5)


if __name__ == "__main__":
    key = jax.random.PRNGKey(0)
    k1, k2 = jax.random.split(key)

    # Case 1: S = 4*16*20 = 1280 (multiple of 128, fits the per-step budget)
    # -> single-step fast path, no masking.
    _run_case(k1, B=4, Cr=8, Cq=16, P=32, T=4, H=16, W=20, num_shards=2)

    # Case 2: S = 5*23*31 = 3565 (not a multiple of 128, exceeds the lane cap)
    # -> multi-step pipelined reduction with a ragged, in-kernel-masked tile.
    _run_case(k2, B=2, Cr=8, Cq=8, P=16, T=5, H=23, W=31, num_shards=1)

    print("KERNEL_OK")
</pallas_src>

<mosaic_0001>
module attributes {stable_mosaic.version = 11 : i64} {
  func.func @_avs_kernel(%arg0: i32, %arg1: memref<4x8x1280xf32, #tpu.memory_space<vmem>>, %arg2: memref<4x16x1280xf32, #tpu.memory_space<vmem>>, %arg3: memref<4x16x1280xf32, #tpu.memory_space<vmem>>, %arg4: memref<8x32xf32, #tpu.memory_space<vmem>>, %arg5: memref<1x32xf32, #tpu.memory_space<vmem>>, %arg6: memref<16x32xf32, #tpu.memory_space<vmem>>, %arg7: memref<1x32xf32, #tpu.memory_space<vmem>>, %arg8: memref<4x1xf32, #tpu.memory_space<vmem>>, %arg9: memref<1x1xf32, #tpu.memory_space<vmem>>, %arg10: memref<4x8x128xf32, #tpu.memory_space<vmem>>, %arg11: memref<4x16x128xf32, #tpu.memory_space<vmem>>, %arg12: memref<4x16x128xf32, #tpu.memory_space<vmem>>) attributes {dimension_semantics = [#tpu.dimension_semantics<arbitrary>], iteration_bounds = array<i64: 1>, scalar_prefetch = 0 : i64, scratch_operands = 3 : i64, tpu.core_type = #tpu.core_type<tc>, window_params = [{transform_indices = @transform_0, window_bounds = array<i64: 4, 8, 1280>}, {transform_indices = @transform_1, window_bounds = array<i64: 4, 16, 1280>}, {transform_indices = @transform_2, window_bounds = array<i64: 4, 16, 1280>}, {pipeline_mode = #tpu.pipeline_mode<synchronous>, transform_indices = @transform_3, window_bounds = array<i64: 8, 32>}, {pipeline_mode = #tpu.pipeline_mode<synchronous>, transform_indices = @transform_4, window_bounds = array<i64: 1, 32>}, {pipeline_mode = #tpu.pipeline_mode<synchronous>, transform_indices = @transform_5, window_bounds = array<i64: 16, 32>}, {pipeline_mode = #tpu.pipeline_mode<synchronous>, transform_indices = @transform_6, window_bounds = array<i64: 1, 32>}, {pipeline_mode = #tpu.pipeline_mode<synchronous>, transform_indices = @transform_7, window_bounds = array<i64: 4, 1>}, {pipeline_mode = #tpu.pipeline_mode<synchronous>, transform_indices = @transform_8, window_bounds = array<i64: 1, 1>}]} {
    %c0_i32 = arith.constant 0 : i32
    %0 = arith.cmpi eq, %arg0, %c0_i32 : i32
    %1 = arith.extui %0 : i1 to i32
    %c0_i32_0 = arith.constant 0 : i32
    %2 = arith.cmpi ne, %1, %c0_i32_0 : i32
    scf.if %2 {
      %cst = arith.constant 0.000000e+00 : f32
      %72 = vector.broadcast %cst : f32 to vector<4x8x128xf32>
      %c0_101 = arith.constant 0 : index
      %c0_102 = arith.constant 0 : index
      %c0_103 = arith.constant 0 : index
      %73 = vector.load %arg10[%c0_101, %c0_102, %c0_103] : memref<4x8x128xf32, #tpu.memory_space<vmem>>, vector<4x8x128xf32>
      tpu.vector_store %arg10[%c0_101, %c0_102, %c0_103], %72 {strides = array<i32>} : memref<4x8x128xf32, #tpu.memory_space<vmem>>, vector<4x8x128xf32>,
      %cst_104 = arith.constant 0.000000e+00 : f32
      %74 = vector.broadcast %cst_104 : f32 to vector<4x16x128xf32>
      %c0_105 = arith.constant 0 : index
      %c0_106 = arith.constant 0 : index
      %c0_107 = arith.constant 0 : index
      %75 = vector.load %arg11[%c0_105, %c0_106, %c0_107] : memref<4x16x128xf32, #tpu.memory_space<vmem>>, vector<4x16x128xf32>
      tpu.vector_store %arg11[%c0_105, %c0_106, %c0_107], %74 {strides = array<i32>} : memref<4x16x128xf32, #tpu.memory_space<vmem>>, vector<4x16x128xf32>,
      %cst_108 = arith.constant 0.000000e+00 : f32
      %76 = vector.broadcast %cst_108 : f32 to vector<4x16x128xf32>
      %c0_109 = arith.constant 0 : index
      %c0_110 = arith.constant 0 : index
      %c0_111 = arith.constant 0 : index
      %77 = vector.load %arg12[%c0_109, %c0_110, %c0_111] : memref<4x16x128xf32, #tpu.memory_space<vmem>>, vector<4x16x128xf32>
      tpu.vector_store %arg12[%c0_109, %c0_110, %c0_111], %76 {strides = array<i32>} : memref<4x16x128xf32, #tpu.memory_space<vmem>>, vector<4x16x128xf32>,
    } else {
    }
    %c0 = arith.constant 0 : index
    %c0_1 = arith.constant 0 : index
    %c0_2 = arith.constant 0 : index
    %3 = vector.load %arg10[%c0, %c0_1, %c0_2] : memref<4x8x128xf32, #tpu.memory_space<vmem>>, vector<4x8x128xf32>
    %c0_3 = arith.constant 0 : index
    %c0_4 = arith.constant 0 : index
    %c0_5 = arith.constant 0 : index
    %4 = vector.load %arg1[%c0_3, %c0_4, %c0_5] : memref<4x8x1280xf32, #tpu.memory_space<vmem>>, vector<4x8x128xf32>
    %c0_6 = arith.constant 0 : index
    %c0_7 = arith.constant 0 : index
    %c128 = arith.constant 128 : index
    %5 = vector.load %arg1[%c0_6, %c0_7, %c128] : memref<4x8x1280xf32, #tpu.memory_space<vmem>>, vector<4x8x128xf32>
    %6 = arith.addf %4, %5 : vector<4x8x128xf32>
    %c0_8 = arith.constant 0 : index
    %c0_9 = arith.constant 0 : index
    %c256 = arith.constant 256 : index
    %7 = vector.load %arg1[%c0_8, %c0_9, %c256] : memref<4x8x1280xf32, #tpu.memory_space<vmem>>, vector<4x8x128xf32>
    %8 = arith.addf %6, %7 : vector<4x8x128xf32>
    %c0_10 = arith.constant 0 : index
    %c0_11 = arith.constant 0 : index
    %c384 = arith.constant 384 : index
    %9 = vector.load %arg1[%c0_10, %c0_11, %c384] : memref<4x8x1280xf32, #tpu.memory_space<vmem>>, vector<4x8x128xf32>
    %10 = arith.addf %8, %9 : vector<4x8x128xf32>
    %c0_12 = arith.constant 0 : index
    %c0_13 = arith.constant 0 : index
    %c512 = arith.constant 512 : index
    %11 = vector.load %arg1[%c0_12, %c0_13, %c512] : memref<4x8x1280xf32, #tpu.memory_space<vmem>>, vector<4x8x128xf32>
    %12 = arith.addf %10, %11 : vector<4x8x128xf32>
    %c0_14 = arith.constant 0 : index
    %c0_15 = arith.constant 0 : index
    %c640 = arith.constant 640 : index
    %13 = vector.load %arg1[%c0_14, %c0_15, %c640] : memref<4x8x1280xf32, #tpu.memory_space<vmem>>, vector<4x8x128xf32>
    %14 = arith.addf %12, %13 : vector<4x8x128xf32>
    %c0_16 = arith.constant 0 : index
    %c0_17 = arith.constant 0 : index
    %c768 = arith.constant 768 : index
    %15 = vector.load %arg1[%c0_16, %c0_17, %c768] : memref<4x8x1280xf32, #tpu.memory_space<vmem>>, vector<4x8x128xf32>
    %16 = arith.addf %14, %15 : vector<4x8x128xf32>
    %c0_18 = arith.constant 0 : index
    %c0_19 = arith.constant 0 : index
    %c896 = arith.constant 896 : index
    %17 = vector.load %arg1[%c0_18, %c0_19, %c896] : memref<4x8x1280xf32, #tpu.memory_space<vmem>>, vector<4x8x128xf32>
    %18 = arith.addf %16, %17 : vector<4x8x128xf32>
    %c0_20 = arith.constant 0 : index
    %c0_21 = arith.constant 0 : index
    %c1024 = arith.constant 1024 : index
    %19 = vector.load %arg1[%c0_20, %c0_21, %c1024] : memref<4x8x1280xf32, #tpu.memory_space<vmem>>, vector<4x8x128xf32>
    %20 = arith.addf %18, %19 : vector<4x8x128xf32>
    %c0_22 = arith.constant 0 : index
    %c0_23 = arith.constant 0 : index
    %c1152 = arith.constant 1152 : index
    %21 = vector.load %arg1[%c0_22, %c0_23, %c1152] : memref<4x8x1280xf32, #tpu.memory_space<vmem>>, vector<4x8x128xf32>
    %22 = arith.addf %20, %21 : vector<4x8x128xf32>
    %23 = arith.addf %3, %22 : vector<4x8x128xf32>
    %c0_24 = arith.constant 0 : index
    %c0_25 = arith.constant 0 : index
    %c0_26 = arith.constant 0 : index
    %24 = vector.load %arg10[%c0_24, %c0_25, %c0_26] : memref<4x8x128xf32, #tpu.memory_space<vmem>>, vector<4x8x128xf32>
    tpu.vector_store %arg10[%c0_24, %c0_25, %c0_26], %23 {strides = array<i32>} : memref<4x8x128xf32, #tpu.memory_space<vmem>>, vector<4x8x128xf32>,
    %c0_27 = arith.constant 0 : index
    %c0_28 = arith.constant 0 : index
    %c0_29 = arith.constant 0 : index
    %25 = vector.load %arg11[%c0_27, %c0_28, %c0_29] : memref<4x16x128xf32, #tpu.memory_space<vmem>>, vector<4x16x128xf32>
    %c0_30 = arith.constant 0 : index
    %c0_31 = arith.constant 0 : index
    %c0_32 = arith.constant 0 : index
    %26 = vector.load %arg2[%c0_30, %c0_31, %c0_32] : memref<4x16x1280xf32, #tpu.memory_space<vmem>>, vector<4x16x128xf32>
    %c0_33 = arith.constant 0 : index
    %c0_34 = arith.constant 0 : index
    %c128_35 = arith.constant 128 : index
    %27 = vector.load %arg2[%c0_33, %c0_34, %c128_35] : memref<4x16x1280xf32, #tpu.memory_space<vmem>>, vector<4x16x128xf32>
    %28 = arith.addf %26, %27 : vector<4x16x128xf32>
    %c0_36 = arith.constant 0 : index
    %c0_37 = arith.constant 0 : index
    %c256_38 = arith.constant 256 : index
    %29 = vector.load %arg2[%c0_36, %c0_37, %c256_38] : memref<4x16x1280xf32, #tpu.memory_space<vmem>>, vector<4x16x128xf32>
    %30 = arith.addf %28, %29 : vector<4x16x128xf32>
    %c0_39 = arith.constant 0 : index
    %c0_40 = arith.constant 0 : index
    %c384_41 = arith.constant 384 : index
    %31 = vector.load %arg2[%c0_39, %c0_40, %c384_41] : memref<4x16x1280xf32, #tpu.memory_space<vmem>>, vector<4x16x128xf32>
    %32 = arith.addf %30, %31 : vector<4x16x128xf32>
    %c0_42 = arith.constant 0 : index
    %c0_43 = arith.constant 0 : index
    %c512_44 = arith.constant 512 : index
    %33 = vector.load %arg2[%c0_42, %c0_43, %c512_44] : memref<4x16x1280xf32, #tpu.memory_space<vmem>>, vector<4x16x128xf32>
    %34 = arith.addf %32, %33 : vector<4x16x128xf32>
    %c0_45 = arith.constant 0 : index
    %c0_46 = arith.constant 0 : index
    %c640_47 = arith.constant 640 : index
    %35 = vector.load %arg2[%c0_45, %c0_46, %c640_47] : memref<4x16x1280xf32, #tpu.memory_space<vmem>>, vector<4x16x128xf32>
    %36 = arith.addf %34, %35 : vector<4x16x128xf32>
    %c0_48 = arith.constant 0 : index
    %c0_49 = arith.constant 0 : index
    %c768_50 = arith.constant 768 : index
    %37 = vector.load %arg2[%c0_48, %c0_49, %c768_50] : memref<4x16x1280xf32, #tpu.memory_space<vmem>>, vector<4x16x128xf32>
    %38 = arith.addf %36, %37 : vector<4x16x128xf32>
    %c0_51 = arith.constant 0 : index
    %c0_52 = arith.constant 0 : index
    %c896_53 = arith.constant 896 : index
    %39 = vector.load %arg2[%c0_51, %c0_52, %c896_53] : memref<4x16x1280xf32, #tpu.memory_space<vmem>>, vector<4x16x128xf32>
    %40 = arith.addf %38, %39 : vector<4x16x128xf32>
    %c0_54 = arith.constant 0 : index
    %c0_55 = arith.constant 0 : index
    %c1024_56 = arith.constant 1024 : index
    %41 = vector.load %arg2[%c0_54, %c0_55, %c1024_56] : memref<4x16x1280xf32, #tpu.memory_space<vmem>>, vector<4x16x128xf32>
    %42 = arith.addf %40, %41 : vector<4x16x128xf32>
    %c0_57 = arith.constant 0 : index
    %c0_58 = arith.constant 0 : index
    %c1152_59 = arith.constant 1152 : index
    %43 = vector.load %arg2[%c0_57, %c0_58, %c1152_59] : memref<4x16x1280xf32, #tpu.memory_space<vmem>>, vector<4x16x128xf32>
    %44 = arith.addf %42, %43 : vector<4x16x128xf32>
    %45 = arith.addf %25, %44 : vector<4x16x128xf32>
    %c0_60 = arith.constant 0 : index
    %c0_61 = arith.constant 0 : index
    %c0_62 = arith.constant 0 : index
    %46 = vector.load %arg11[%c0_60, %c0_61, %c0_62] : memref<4x16x128xf32, #tpu.memory_space<vmem>>, vector<4x16x128xf32>
    tpu.vector_store %arg11[%c0_60, %c0_61, %c0_62], %45 {strides = array<i32>} : memref<4x16x128xf32, #tpu.memory_space<vmem>>, vector<4x16x128xf32>,
    %c0_63 = arith.constant 0 : index
    %c0_64 = arith.constant 0 : index
    %c0_65 = arith.constant 0 : index
    %47 = vector.load %arg12[%c0_63, %c0_64, %c0_65] : memref<4x16x128xf32, #tpu.memory_space<vmem>>, vector<4x16x128xf32>
    %c0_66 = arith.constant 0 : index
    %c0_67 = arith.constant 0 : index
    %c0_68 = arith.constant 0 : index
    %48 = vector.load %arg3[%c0_66, %c0_67, %c0_68] : memref<4x16x1280xf32, #tpu.memory_space<vmem>>, vector<4x16x128xf32>
    %c0_69 = arith.constant 0 : index
    %c0_70 = arith.constant 0 : index
    %c128_71 = arith.constant 128 : index
    %49 = vector.load %arg3[%c0_69, %c0_70, %c128_71] : memref<4x16x1280xf32, #tpu.memory_space<vmem>>, vector<4x16x128xf32>
    %50 = arith.addf %48, %49 : vector<4x16x128xf32>
    %c0_72 = arith.constant 0 : index
    %c0_73 = arith.constant 0 : index
    %c256_74 = arith.constant 256 : index
    %51 = vector.load %arg3[%c0_72, %c0_73, %c256_74] : memref<4x16x1280xf32, #tpu.memory_space<vmem>>, vector<4x16x128xf32>
    %52 = arith.addf %50, %51 : vector<4x16x128xf32>
    %c0_75 = arith.constant 0 : index
    %c0_76 = arith.constant 0 : index
    %c384_77 = arith.constant 384 : index
    %53 = vector.load %arg3[%c0_75, %c0_76, %c384_77] : memref<4x16x1280xf32, #tpu.memory_space<vmem>>, vector<4x16x128xf32>
    %54 = arith.addf %52, %53 : vector<4x16x128xf32>
    %c0_78 = arith.constant 0 : index
    %c0_79 = arith.constant 0 : index
    %c512_80 = arith.constant 512 : index
    %55 = vector.load %arg3[%c0_78, %c0_79, %c512_80] : memref<4x16x1280xf32, #tpu.memory_space<vmem>>, vector<4x16x128xf32>
    %56 = arith.addf %54, %55 : vector<4x16x128xf32>
    %c0_81 = arith.constant 0 : index
    %c0_82 = arith.constant 0 : index
    %c640_83 = arith.constant 640 : index
    %57 = vector.load %arg3[%c0_81, %c0_82, %c640_83] : memref<4x16x1280xf32, #tpu.memory_space<vmem>>, vector<4x16x128xf32>
    %58 = arith.addf %56, %57 : vector<4x16x128xf32>
    %c0_84 = arith.constant 0 : index
    %c0_85 = arith.constant 0 : index
    %c768_86 = arith.constant 768 : index
    %59 = vector.load %arg3[%c0_84, %c0_85, %c768_86] : memref<4x16x1280xf32, #tpu.memory_space<vmem>>, vector<4x16x128xf32>
    %60 = arith.addf %58, %59 : vector<4x16x128xf32>
    %c0_87 = arith.constant 0 : index
    %c0_88 = arith.constant 0 : index
    %c896_89 = arith.constant 896 : index
    %61 = vector.load %arg3[%c0_87, %c0_88, %c896_89] : memref<4x16x1280xf32, #tpu.memory_space<vmem>>, vector<4x16x128xf32>
    %62 = arith.addf %60, %61 : vector<4x16x128xf32>
    %c0_90 = arith.constant 0 : index
    %c0_91 = arith.constant 0 : index
    %c1024_92 = arith.constant 1024 : index
    %63 = vector.load %arg3[%c0_90, %c0_91, %c1024_92] : memref<4x16x1280xf32, #tpu.memory_space<vmem>>, vector<4x16x128xf32>
    %64 = arith.addf %62, %63 : vector<4x16x128xf32>
    %c0_93 = arith.constant 0 : index
    %c0_94 = arith.constant 0 : index
    %c1152_95 = arith.constant 1152 : index
    %65 = vector.load %arg3[%c0_93, %c0_94, %c1152_95] : memref<4x16x1280xf32, #tpu.memory_space<vmem>>, vector<4x16x128xf32>
    %66 = arith.addf %64, %65 : vector<4x16x128xf32>
    %67 = arith.addf %47, %66 : vector<4x16x128xf32>
    %c0_96 = arith.constant 0 : index
    %c0_97 = arith.constant 0 : index
    %c0_98 = arith.constant 0 : index
    %68 = vector.load %arg12[%c0_96, %c0_97, %c0_98] : memref<4x16x128xf32, #tpu.memory_space<vmem>>, vector<4x16x128xf32>
    tpu.vector_store %arg12[%c0_96, %c0_97, %c0_98], %67 {strides = array<i32>} : memref<4x16x128xf32, #tpu.memory_space<vmem>>, vector<4x16x128xf32>,
    %c0_i32_99 = arith.constant 0 : i32
    %69 = arith.cmpi eq, %arg0, %c0_i32_99 : i32
    %70 = arith.extui %69 : i1 to i32
    %c0_i32_100 = arith.constant 0 : i32
    %71 = arith.cmpi ne, %70, %c0_i32_100 : i32
    scf.if %71 {
      %c0_101 = arith.constant 0 : index
      %c0_102 = arith.constant 0 : index
      %c0_103 = arith.constant 0 : index
      %72 = vector.load %arg10[%c0_101, %c0_102, %c0_103] : memref<4x8x128xf32, #tpu.memory_space<vmem>>, vector<4x8x128xf32>
      %cst = arith.constant dense<0.000000e+00> : vector<4x8xf32>
      %73 = vector.multi_reduction <add>, %72, %cst [2] : vector<4x8x128xf32> to vector<4x8xf32>
      %cst_104 = arith.constant 7.812500e-04 : f32
      %74 = vector.broadcast %cst_104 : f32 to vector<4x8xf32>
      %75 = arith.mulf %73, %74 : vector<4x8xf32>
      %c0_105 = arith.constant 0 : index
      %c0_106 = arith.constant 0 : index
      %c0_107 = arith.constant 0 : index
      %76 = vector.load %arg11[%c0_105, %c0_106, %c0_107] : memref<4x16x128xf32, #tpu.memory_space<vmem>>, vector<4x16x128xf32>
      %cst_108 = arith.constant dense<0.000000e+00> : vector<4x16xf32>
      %77 = vector.multi_reduction <add>, %76, %cst_108 [2] : vector<4x16x128xf32> to vector<4x16xf32>
      %cst_109 = arith.constant 7.812500e-04 : f32
      %78 = vector.broadcast %cst_109 : f32 to vector<4x16xf32>
      %79 = arith.mulf %77, %78 : vector<4x16xf32>
      %c0_110 = arith.constant 0 : index
      %c0_111 = arith.constant 0 : index
      %c0_112 = arith.constant 0 : index
      %80 = vector.load %arg12[%c0_110, %c0_111, %c0_112] : memref<4x16x128xf32, #tpu.memory_space<vmem>>, vector<4x16x128xf32>
      %cst_113 = arith.constant dense<0.000000e+00> : vector<4x16xf32>
      %81 = vector.multi_reduction <add>, %80, %cst_113 [2] : vector<4x16x128xf32> to vector<4x16xf32>
      %cst_114 = arith.constant 7.812500e-04 : f32
      %82 = vector.broadcast %cst_114 : f32 to vector<4x16xf32>
      %83 = arith.mulf %81, %82 : vector<4x16xf32>
      %c0_115 = arith.constant 0 : index
      %c0_116 = arith.constant 0 : index
      %84 = vector.load %arg4[%c0_115, %c0_116] : memref<8x32xf32, #tpu.memory_space<vmem>>, vector<8x32xf32>
      %cst_117 = arith.constant dense<0.000000e+00> : vector<4x32xf32>
      %85 = tpu.matmul %75, %84, %cst_117 {dimension_numbers = #tpu.dot_dimension_numbers<[1], [0], [0], [1], [0, 0, 1, 1], [], []>} : vector<4x8xf32>, vector<8x32xf32>, vector<4x32xf32> -> vector<4x32xf32>
      %c0_118 = arith.constant 0 : index
      %c0_119 = arith.constant 0 : index
      %86 = vector.load %arg5[%c0_118, %c0_119] : memref<1x32xf32, #tpu.memory_space<vmem>>, vector<1x32xf32>
      %87 = vector.broadcast %86 : vector<1x32xf32> to vector<4x32xf32>
      %88 = arith.addf %85, %87 : vector<4x32xf32>
      %c0_120 = arith.constant 0 : index
      %c0_121 = arith.constant 0 : index
      %89 = vector.load %arg6[%c0_120, %c0_121] : memref<16x32xf32, #tpu.memory_space<vmem>>, vector<16x32xf32>
      %cst_122 = arith.constant dense<0.000000e+00> : vector<4x32xf32>
      %90 = tpu.matmul %79, %89, %cst_122 {dimension_numbers = #tpu.dot_dimension_numbers<[1], [0], [0], [1], [0, 0, 1, 1], [], []>} : vector<4x16xf32>, vector<16x32xf32>, vector<4x32xf32> -> vector<4x32xf32>
      %c0_123 = arith.constant 0 : index
      %c0_124 = arith.constant 0 : index
      %91 = vector.load %arg7[%c0_123, %c0_124] : memref<1x32xf32, #tpu.memory_space<vmem>>, vector<1x32xf32>
      %92 = vector.broadcast %91 : vector<1x32xf32> to vector<4x32xf32>
      %93 = arith.addf %90, %92 : vector<4x32xf32>
      %c0_125 = arith.constant 0 : index
      %c0_126 = arith.constant 0 : index
      %94 = vector.load %arg6[%c0_125, %c0_126] : memref<16x32xf32, #tpu.memory_space<vmem>>, vector<16x32xf32>
      %cst_127 = arith.constant dense<0.000000e+00> : vector<4x32xf32>
      %95 = tpu.matmul %83, %94, %cst_127 {dimension_numbers = #tpu.dot_dimension_numbers<[1], [0], [0], [1], [0, 0, 1, 1], [], []>} : vector<4x16xf32>, vector<16x32xf32>, vector<4x32xf32> -> vector<4x32xf32>
      %c0_128 = arith.constant 0 : index
      %c0_129 = arith.constant 0 : index
      %96 = vector.load %arg7[%c0_128, %c0_129] : memref<1x32xf32, #tpu.memory_space<vmem>>, vector<1x32xf32>
      %97 = vector.broadcast %96 : vector<1x32xf32> to vector<4x32xf32>
      %98 = arith.addf %95, %97 : vector<4x32xf32>
      %99 = arith.mulf %88, %88 : vector<4x32xf32>
      %cst_130 = arith.constant dense<0.000000e+00> : vector<4xf32>
      %100 = vector.multi_reduction <add>, %99, %cst_130 [1] : vector<4x32xf32> to vector<4xf32>
      %101 = vector.shape_cast %100 : vector<4xf32> to vector<4x1xf32>
      %cst_131 = arith.constant 1.000000e-24 : f32
      %102 = vector.broadcast %cst_131 : f32 to vector<4x1xf32>
      %103 = arith.maximumf %101, %102 : vector<4x1xf32>
      %104 = math.rsqrt %103 : vector<4x1xf32>
      %105 = vector.broadcast %104 : vector<4x1xf32> to vector<4x32xf32>
      %106 = arith.mulf %88, %105 : vector<4x32xf32>
      %cst_132 = arith.constant 5.000000e-01 : f32
      %107 = vector.broadcast %cst_132 : f32 to vector<4x32xf32>
      %108 = arith.mulf %106, %107 : vector<4x32xf32>
      %109 = arith.mulf %93, %93 : vector<4x32xf32>
      %cst_133 = arith.constant dense<0.000000e+00> : vector<4xf32>
      %110 = vector.multi_reduction <add>, %109, %cst_133 [1] : vector<4x32xf32> to vector<4xf32>
      %111 = vector.shape_cast %110 : vector<4xf32> to vector<4x1xf32>
      %cst_134 = arith.constant 1.000000e-24 : f32
      %112 = vector.broadcast %cst_134 : f32 to vector<4x1xf32>
      %113 = arith.maximumf %111, %112 : vector<4x1xf32>
      %114 = math.rsqrt %113 : vector<4x1xf32>
      %115 = vector.broadcast %114 : vector<4x1xf32> to vector<4x32xf32>
      %116 = arith.mulf %93, %115 : vector<4x32xf32>
      %cst_135 = arith.constant 5.000000e-01 : f32
      %117 = vector.broadcast %cst_135 : f32 to vector<4x32xf32>
      %118 = arith.mulf %116, %117 : vector<4x32xf32>
      %119 = arith.mulf %98, %98 : vector<4x32xf32>
      %cst_136 = arith.constant dense<0.000000e+00> : vector<4xf32>
      %120 = vector.multi_reduction <add>, %119, %cst_136 [1] : vector<4x32xf32> to vector<4xf32>
      %121 = vector.shape_cast %120 : vector<4xf32> to vector<4x1xf32>
      %cst_137 = arith.constant 1.000000e-24 : f32
      %122 = vector.broadcast %cst_137 : f32 to vector<4x1xf32>
      %123 = arith.maximumf %121, %122 : vector<4x1xf32>
      %124 = math.rsqrt %123 : vector<4x1xf32>
      %125 = vector.broadcast %124 : vector<4x1xf32> to vector<4x32xf32>
      %126 = arith.mulf %98, %125 : vector<4x32xf32>
      %cst_138 = arith.constant 5.000000e-01 : f32
      %127 = vector.broadcast %cst_138 : f32 to vector<4x32xf32>
      %128 = arith.mulf %126, %127 : vector<4x32xf32>
      %c0_139 = arith.constant 0 : index
      %c0_140 = arith.constant 0 : index
      %129 = vector.load %arg8[%c0_139, %c0_140] : memref<4x1xf32, #tpu.memory_space<vmem>>, vector<4x1xf32>
      %130 = arith.subf %108, %118 : vector<4x32xf32>
      %131 = arith.mulf %130, %130 : vector<4x32xf32>
      %cst_141 = arith.constant dense<0.000000e+00> : vector<4xf32>
      %132 = vector.multi_reduction <add>, %131, %cst_141 [1] : vector<4x32xf32> to vector<4xf32>
      %133 = vector.shape_cast %132 : vector<4xf32> to vector<4x1xf32>
      %134 = arith.subf %108, %128 : vector<4x32xf32>
      %135 = arith.mulf %134, %134 : vector<4x32xf32>
      %cst_142 = arith.constant dense<0.000000e+00> : vector<4xf32>
      %136 = vector.multi_reduction <add>, %135, %cst_142 [1] : vector<4x32xf32> to vector<4xf32>
      %137 = vector.shape_cast %136 : vector<4xf32> to vector<4x1xf32>
      %138 = arith.mulf %129, %133 : vector<4x1xf32>
      %139 = vector.shape_cast %138 : vector<4x1xf32> to vector<1x4x1xf32>
      %cst_143 = arith.constant dense<0.000000e+00> : vector<1xf32>
      %140 = vector.multi_reduction <add>, %139, %cst_143 [1, 2] : vector<1x4x1xf32> to vector<1xf32>
      %141 = vector.shape_cast %140 : vector<1xf32> to vector<1x1x1xf32>
      %142 = vector.extract %141[0, 0, 0] : f32 from vector<1x1x1xf32>
      %143 = math.sqrt %137 : vector<4x1xf32>
      %cst_144 = arith.constant 9.900000e-01 : f32
      %144 = vector.broadcast %cst_144 : f32 to vector<4x1xf32>
      %145 = arith.subf %144, %143 : vector<4x1xf32>
      %cst_145 = arith.constant 0.000000e+00 : f32
      %146 = vector.broadcast %cst_145 : f32 to vector<4x1xf32>
      %147 = arith.maximumf %145, %146 : vector<4x1xf32>
      %148 = arith.mulf %129, %147 : vector<4x1xf32>
      %149 = arith.mulf %148, %147 : vector<4x1xf32>
      %150 = vector.shape_cast %149 : vector<4x1xf32> to vector<1x4x1xf32>
      %cst_146 = arith.constant dense<0.000000e+00> : vector<1xf32>
      %151 = vector.multi_reduction <add>, %150, %cst_146 [1, 2] : vector<1x4x1xf32> to vector<1xf32>
      %152 = vector.shape_cast %151 : vector<1xf32> to vector<1x1x1xf32>
      %153 = vector.extract %152[0, 0, 0] : f32 from vector<1x1x1xf32>
      %154 = vector.shape_cast %129 : vector<4x1xf32> to vector<1x4x1xf32>
      %cst_147 = arith.constant dense<0.000000e+00> : vector<1xf32>
      %155 = vector.multi_reduction <add>, %154, %cst_147 [1, 2] : vector<1x4x1xf32> to vector<1xf32>
      %156 = vector.shape_cast %155 : vector<1xf32> to vector<1x1x1xf32>
      %157 = vector.extract %156[0, 0, 0] : f32 from vector<1x1x1xf32>
      %158 = arith.addf %142, %153 : f32
      %cst_148 = arith.constant 2.000000e+00 : f32
      %159 = arith.mulf %cst_148, %157 : f32
      %cst_149 = arith.constant 9.99999993E-9 : f32
      %160 = arith.addf %159, %cst_149 : f32
      %161 = arith.divf %158, %160 : f32
      %cst_150 = arith.constant 5.000000e-01 : f32
      %162 = arith.mulf %161, %cst_150 : f32
      %163 = vector.broadcast %162 : f32 to vector<1x1xf32>
      %c0_151 = arith.constant 0 : index
      %c0_152 = arith.constant 0 : index
      %164 = vector.load %arg9[%c0_151, %c0_152] : memref<1x1xf32, #tpu.memory_space<vmem>>, vector<1x1xf32>
      tpu.vector_store %arg9[%c0_151, %c0_152], %163 {strides = array<i32>} : memref<1x1xf32, #tpu.memory_space<vmem>>, vector<1x1xf32>,
    } else {
    }
    return
  }
  func.func @transform_0(%arg0: i32) -> (i32, i32, i32) {
    %c0_i32 = arith.constant 0 : i32
    %c0_i32_0 = arith.constant 0 : i32
    %c0_i32_1 = arith.constant 0 : i32
    return %c0_i32, %c0_i32_0, %arg0 : i32, i32, i32
  }
  func.func @transform_1(%arg0: i32) -> (i32, i32, i32) {
    %c0_i32 = arith.constant 0 : i32
    %c0_i32_0 = arith.constant 0 : i32
    %c0_i32_1 = arith.constant 0 : i32
    return %c0_i32, %c0_i32_0, %arg0 : i32, i32, i32
  }
  func.func @transform_2(%arg0: i32) -> (i32, i32, i32) {
    %c0_i32 = arith.constant 0 : i32
    %c0_i32_0 = arith.constant 0 : i32
    %c0_i32_1 = arith.constant 0 : i32
    return %c0_i32, %c0_i32_0, %arg0 : i32, i32, i32
  }
  func.func @transform_3(%arg0: i32) -> (i32, i32) {
    %c0_i32 = arith.constant 0 : i32
    %c0_i32_0 = arith.constant 0 : i32
    %c0_i32_1 = arith.constant 0 : i32
    return %c0_i32, %c0_i32_0 : i32, i32
  }
  func.func @transform_4(%arg0: i32) -> (i32, i32) {
    %c0_i32 = arith.constant 0 : i32
    %c0_i32_0 = arith.constant 0 : i32
    %c0_i32_1 = arith.constant 0 : i32
    return %c0_i32, %c0_i32_0 : i32, i32
  }
  func.func @transform_5(%arg0: i32) -> (i32, i32) {
    %c0_i32 = arith.constant 0 : i32
    %c0_i32_0 = arith.constant 0 : i32
    %c0_i32_1 = arith.constant 0 : i32
    return %c0_i32, %c0_i32_0 : i32, i32
  }
  func.func @transform_6(%arg0: i32) -> (i32, i32) {
    %c0_i32 = arith.constant 0 : i32
    %c0_i32_0 = arith.constant 0 : i32
    %c0_i32_1 = arith.constant 0 : i32
    return %c0_i32, %c0_i32_0 : i32, i32
  }
  func.func @transform_7(%arg0: i32) -> (i32, i32) {
    %c0_i32 = arith.constant 0 : i32
    %c0_i32_0 = arith.constant 0 : i32
    %c0_i32_1 = arith.constant 0 : i32
    return %c0_i32, %c0_i32_0 : i32, i32
  }
  func.func @transform_8(%arg0: i32) -> (i32, i32) {
    %c0_i32 = arith.constant 0 : i32
    %c0_i32_0 = arith.constant 0 : i32
    %c0_i32_1 = arith.constant 0 : i32
    return %c0_i32, %c0_i32_0 : i32, i32
  }
}

</mosaic_0001>

<bundles_post_ra>
// kernel: tpu_custom_call.1
= control target key start
LH: loop header
LB: loop body
LE: loop exit
PB: predicated region body
PF: predicated region fallthrough
CT: control target
= control target key end

     0   :  { %13 = vsyncpa [#allocation6], 0  ;;  %s1399_s0 = inlined_call_operand.hbm [shape: f32[4,8,1280], index: 0, kind: input, shape index: {}]   ;;  %s1400_s1 = inlined_call_operand.hbm [shape: f32[4,16,1280], index: 1, kind: input, shape index: {}]   ;;  %s1401_s2 = inlined_call_operand.hbm [shape: f32[4,16,1280], index: 2, kind: input, shape index: {}]   ;;  %s1402_s3 = inlined_call_operand.vmem [shape: f32[8,32], index: 3, kind: input, shape index: {}]   ;;  %s1403_s4 = inlined_call_operand.vmem [shape: f32[1,32], index: 4, kind: input, shape index: {}]   ;;  %s1404_s5 = inlined_call_operand.hbm [shape: f32[16,32], index: 5, kind: input, shape index: {}]   ;;  %s1405_s6 = inlined_call_operand.vmem [shape: f32[1,32], index: 6, kind: input, shape index: {}]   ;;  %s1406_s7 = inlined_call_operand.vmem [shape: f32[4,1], index: 7, kind: input, shape index: {}]   ;;  %s1407_s8 = inlined_call_operand.hbm [shape: f32[1,1], index: 8, kind: output, shape index: {}]  }
   0x1   :  { %14 = vsyncpa [#allocation9], 0 }
   0x2   :  { %15 = vsyncpa [#allocation12], 0 }
   0x3   :  { %16 = vsyncpa [#allocation7], 0  ;;  %s1267_s27 = smov [#allocation8]   ;;  %s1268_s29 = smov [#allocation5]  }
   0x4   :  { %s34_s28 = sshll.u32 %s1267_s27, 4  ;;  %s22_s30 = sshll.u32 %s1268_s29, 4  ;;  %s35_s28 = int_to_ptr.vmem [resolvable:$true] %s34_s28  ;;  %s23_s30 = int_to_ptr.vmem [resolvable:$true] %s22_s30 }
   0x5   :  { %s1167_s9 = scalar_lea.vmem %s35_s28, 10240  ;;  %p1172_p1 = scmp.lt.s32.totalorder %s35_s28, %s35_s28 }
   0x6   :  { %p1168_p0 = scmp.ne.s32.totalorder %s35_s28, %s1167_s9  ;;  %p1173_p2 = scmp.lt.s32.totalorder %s1167_s9, %s1167_s9 }
   0x8   :  { %p1174_p3 = por %p1173_p2, %p1172_p1 }
   0xa   :  { %p1175_p4 = pnand %p1174_p3, %p1168_p0 }
   0xc   :  { %1178 = shalt.err (!%p1175_p4)
}
   0xd   :  { %s1269_s10 = smov 1280   ;;  %s1270_s11 = smov 80  }
   0xe   :  { %40 = dma.hbm_to_vmem [thread:$0]  %s1400_s1, 10240, %s35_s28, [#allocation9], %s1269_s10, %s1269_s10, %s1270_s11  }
   0xf   :  { %s1187_s14 = scalar_lea.vmem %s23_s30, 5120  ;;  %p1192_p6 = scmp.lt.s32.totalorder %s23_s30, %s23_s30 }
  0x10   :  { %p1188_p5 = scmp.ne.s32.totalorder %s23_s30, %s1187_s14  ;;  %p1193_p7 = scmp.lt.s32.totalorder %s1187_s14, %s1187_s14 }
  0x12   :  { %p1194_p8 = por %p1193_p7, %p1192_p6 }
  0x14   :  { %p1195_p9 = pnand %p1194_p8, %p1188_p5 }
  0x16   :  { %1198 = shalt.err (!%p1195_p9)
}
  0x17   :  { %28 = dma.hbm_to_vmem [thread:$0]  %s1399_s0, 5120, %s23_s30, [#allocation6], %s1269_s10, %s1269_s10, %s1270_s11  }
  0x18   :  { %s1271_s17 = smov [#allocation10]   ;;  %s1272_s19 = smov [#allocation11]  }
  0x19   :  { %s46_s18 = sshll.u32 %s1271_s17, 4  ;;  %s62_s20 = sshll.u32 %s1272_s19, 4  ;;  %s47_s18 = int_to_ptr.vmem [resolvable:$true] %s46_s18  ;;  %s63_s20 = int_to_ptr.vmem [resolvable:$true] %s62_s20 }
  0x1a   :  { %s1207_s21 = scalar_lea.vmem %s47_s18, 10240  ;;  %p1212_p11 = scmp.lt.s32.totalorder %s47_s18, %s47_s18 }
  0x1b   :  { %p1208_p10 = scmp.ne.s32.totalorder %s47_s18, %s1207_s21  ;;  %p1213_p12 = scmp.lt.s32.totalorder %s1207_s21, %s1207_s21 }
  0x1d   :  { %p1214_p13 = por %p1213_p12, %p1212_p11 }
  0x1f   :  { %p1215_p0 = pnand %p1214_p13, %p1208_p10 }
  0x21   :  { %1218 = shalt.err (!%p1215_p0)
}
  0x22   :  { %52 = dma.hbm_to_vmem [thread:$0]  %s1401_s2, 10240, %s47_s18, [#allocation9], %s1269_s10, %s1269_s10, %s1270_s11  }
  0x23   :  { %s1227_s23 = scalar_lea.vmem %s63_s20, 256  ;;  %p1232_p2 = scmp.lt.s32.totalorder %s63_s20, %s63_s20 }
  0x24   :  { %p1228_p1 = scmp.ne.s32.totalorder %s63_s20, %s1227_s23  ;;  %p1233_p3 = scmp.lt.s32.totalorder %s1227_s23, %s1227_s23 }
  0x26   :  { %p1234_p4 = por %p1233_p3, %p1232_p2 }
  0x28   :  { %p1235_p5 = pnand %p1234_p4, %p1228_p1 }
  0x2a   :  { %1238 = shalt.err (!%p1235_p5)
}
  0x2b   :  { %s1273_s0 = smov 128   ;;  %s1274_s24 = smov 8  }
  0x2c   :  { %68 = dma.hbm_to_vmem [thread:$0]  %s1404_s5, 256, %s63_s20, [#allocation12], %s1273_s0, %s1273_s0, %s1274_s24  }
  0x2d   :  { %1259 = dma.done.wait [#allocation6], 5120  }
  0x2e   :  { %1260 = vsyncadd [#allocation6], 4294962176 }
  0x2f   :  { %1261 = dma.done.wait [#allocation9], 20480  }
  0x30   :  { %1262 = vsyncadd [#allocation9], 4294946816 }
  0x31   :  { %1263 = dma.done.wait [#allocation12], 256  }
  0x32   :  { %1264 = vsyncadd [#allocation12], 4294967040  ;;  %v115_v0 = vld [vmem:[#allocation5 + $0xa0] sm:$0xff]  ;;  %v119_v1 = vld [vmem:[#allocation5 + $0xa8] sm:$0xff]  ;;  %vm1276_vm0 = vmmov 0   ;;  %vm662_vm1 = vcmask 1041409  }
  0x33   :  { %v127_v2 = vld [vmem:[#allocation5 + $0xb0] sm:$0xff]  ;;  %v123_v3 = vadd.f32 %v119_v1, %v115_v0  ;;  %v135_v4 = vld [vmem:[#allocation5 + $0xb8] sm:$0xff]  ;;  %v113_v6 = vld [vmem:[#allocation5] sm:$0xff]  ;;  %vm664_vm2 = vcmask 1042434   ;;  %vm666_vm3 = vcmask 1043459   ;;  %vm668_vm4 = vcmask 64512  }
  0x34   :  { %v117_v7 = vld [vmem:[#allocation5 + $0x8] sm:$0xff]  ;;  %v143_v8 = vld [vmem:[#allocation5 + $0xc0] sm:$0xff]  ;;  %v125_v10 = vld [vmem:[#allocation5 + $0x10] sm:$0xff]  ;;  %vm767_vm5 = vcmask 130112   ;;  %vm799_vm6 = vcmask 130048   ;;  %vm992_vm7 = vcmask 257024  }
  0x35   :  { %v131_v5 = vadd.f32 %v127_v2, %v123_v3  ;;  %v121_v9 = vadd.f32 %v117_v7, %v113_v6  ;;  %v133_v12 = vld [vmem:[#allocation5 + $0x18] sm:$0xff]  ;;  %v151_v13 = vld [vmem:[#allocation5 + $0xc8] sm:$0xff]  ;;  %v116_v15 = vld [vmem:[#allocation5 + $0xf0] sm:$0xff]  ;;  %vm1028_vm10 = vcmask 3072   ;;  %s1277_s15 = smov [#allocation13]   ;;  %vm1079_vm11 = vcmask 0  }
  0x36   :  { %v141_v17 = vld [vmem:[#allocation5 + $0x20] sm:$0xff]  ;;  %v120_v18 = vld [vmem:[#allocation5 + $0xf8] sm:$0xff]  ;;  %v159_v20 = vld [vmem:[#allocation5 + $0xd0] sm:$0xff]  ;;  %s1087_s16 = sshll.u32 %s1277_s15, 4  ;;  %s1088_s16 = int_to_ptr.vmem [resolvable:$true] %s1087_s16 }
  0x37   :  { %v139_v11 = vadd.f32 %v135_v4, %v131_v5  ;;  %v129_v14 = vadd.f32 %v125_v10, %v121_v9  ;;  %v128_v19 = vld [vmem:[#allocation5 + $0x100] sm:$0xff]  ;;  %v124_v22 = vadd.f32 %v120_v18, %v116_v15  ;;  %v167_v24 = vld [vmem:[#allocation5 + $0xd8] sm:$0xff]  ;;  %v149_v25 = vld [vmem:[#allocation5 + $0x28] sm:$0xff]  ;;  %s1239_s18 = scalar_lea.vmem %s1088_s16, 16  ;;  %s1243_s19 = scalar_lea.vmem %s1088_s16, 32 }
  0x38   :  { %v136_v26 = vld [vmem:[#allocation5 + $0x108] sm:$0xff]  ;;  %v114_v29 = vld [vmem:[#allocation5 + $0x50] sm:$0xff]  ;;  %v118_v30 = vld [vmem:[#allocation5 + $0x58] sm:$0xff]  ;;  %p1240_p6 = scmp.ne.s32.totalorder %s1088_s16, %s1239_s18  ;;  %p1244_p7 = scmp.lt.s32.totalorder %s1088_s16, %s1088_s16 }
  0x39   :  { %v147_v16 = vadd.f32 %v143_v8, %v139_v11  ;;  %v137_v21 = vadd.f32 %v133_v12, %v129_v14  ;;  %v132_v28 = vadd.f32 %v128_v19, %v124_v22  ;;  %v126_v31 = vld [vmem:[#allocation5 + $0x60] sm:$0xff]  ;;  %v157_v34 = vld [vmem:[#allocation5 + $0x30] sm:$0xff]  ;;  %v122_v36 = vadd.f32 %v118_v30, %v114_v29  ;;  %v183_v37 = vld [vmem:[#allocation5 + $0xe8] sm:$0xff]  ;;  %p1245_p8 = scmp.lt.s32.totalorder %s1243_s19, %s1239_s18 }
  0x3a   :  { %v175_v33 = vld [vmem:[#allocation5 + $0xe0] sm:$0xff]  ;;  %v144_v35 = vld [vmem:[#allocation5 + $0x110] sm:$0xff]  ;;  %v165_v39 = vld [vmem:[#allocation5 + $0x38] sm:$0xff] }
  0x3b   :  { %v155_v23 = vadd.f32 %v151_v13, %v147_v16  ;;  %v145_v27 = vadd.f32 %v141_v17, %v137_v21  ;;  %v140_v40 = vadd.f32 %v136_v26, %v132_v28  ;;  %v134_v41 = vld [vmem:[#allocation5 + $0x68] sm:$0xff]  ;;  %v152_v43 = vld [vmem:[#allocation5 + $0x118] sm:$0xff]  ;;  %v130_v44 = vadd.f32 %v126_v31, %v122_v36  ;;  %v382_v45 = vld [vmem:[#allocation10 + $0x50] sm:$0xff]  ;;  %p1246_p9 = por %p1245_p8, %p1244_p7 }
  0x3c   :  { %v390_v46 = vld [vmem:[#allocation10 + $0x58] sm:$0xff]  ;;  %v173_v48 = vld [vmem:[#allocation5 + $0x40] sm:$0xff]  ;;  %v142_v50 = vld [vmem:[#allocation5 + $0x70] sm:$0xff] }
  0x3d   :  { %v163_v32 = vadd.f32 %v159_v20, %v155_v23  ;;  %v153_v38 = vadd.f32 %v149_v25, %v145_v27  ;;  %v148_v49 = vadd.f32 %v144_v35, %v140_v40  ;;  %v398_v51 = vadd.f32 %v390_v46, %v382_v45  ;;  %v406_v52 = vld [vmem:[#allocation10 + $0x60] sm:$0xff]  ;;  %v181_v54 = vld [vmem:[#allocation5 + $0x48] sm:$0xff]  ;;  %v150_v61 = vld [vmem:[#allocation5 + $0x78] sm:$0xff]  ;;  %p1247_p10 = pnand %p1246_p9, %p1240_p6 }
  0x3e   :  { %v160_v55 = vld [vmem:[#allocation5 + $0x120] sm:$0xff]  ;;  %v138_v56 = vadd.f32 %v134_v41, %v130_v44  ;;  %v422_v57 = vld [vmem:[#allocation10 + $0x68] sm:$0xff]  ;;  %v438_v2 = vld [vmem:[#allocation10 + $0x70] sm:$0xff] }
  0x3f   :  { %v171_v42 = vadd.f32 %v167_v24, %v163_v32  ;;  %v161_v47 = vadd.f32 %v157_v34, %v153_v38  ;;  %v156_v59 = vadd.f32 %v152_v43, %v148_v49  ;;  %v168_v60 = vld [vmem:[#allocation5 + $0x128] sm:$0xff]  ;;  %v414_v62 = vadd.f32 %v406_v52, %v398_v51  ;;  %v381_v63 = vld [vmem:[#allocation10] sm:$0xff]  ;;  %v405_v4 = vld [vmem:[#allocation10 + $0x10] sm:$0xff] }
  0x40   :  { %v146_v1 = vadd.f32 %v142_v50, %v138_v56  ;;  %v389_v3 = vld [vmem:[#allocation10 + $0x8] sm:$0xff]  ;;  %v176_v7 = vld [vmem:[#allocation5 + $0x130] sm:$0xff]  ;;  %v158_v8 = vld [vmem:[#allocation5 + $0x80] sm:$0xff] }
  0x41   :  { %v179_v53 = vadd.f32 %v175_v33, %v171_v42  ;;  %v169_v58 = vadd.f32 %v165_v39, %v161_v47  ;;  %v164_v6 = vadd.f32 %v160_v55, %v156_v59  ;;  %v430_v9 = vadd.f32 %v422_v57, %v414_v62  ;;  %v184_v11 = vld [vmem:[#allocation5 + $0x138] sm:$0xff]  ;;  %v166_v13 = vld [vmem:[#allocation5 + $0x88] sm:$0xff]  ;;  %v384_v20 = vld [vmem:[#allocation10 + $0xf0] sm:$0xff] }
  0x42   :  { %v397_v10 = vadd.f32 %v389_v3, %v381_v63  ;;  %v154_v12 = vadd.f32 %v150_v61, %v146_v1  ;;  %v454_v14 = vld [vmem:[#allocation10 + $0x78] sm:$0xff]  ;;  %v408_v22 = vld [vmem:[#allocation10 + $0x100] sm:$0xff]  ;;  %v174_v24 = vld [vmem:[#allocation5 + $0x90] sm:$0xff] }
  0x43   :  { %v187_v0 = vadd.f32 %v183_v37, %v179_v53  ;;  %v177_v5 = vadd.f32 %v173_v48, %v169_v58  ;;  %v421_v15 = vld [vmem:[#allocation10 + $0x18] sm:$0xff]  ;;  %v172_v17 = vadd.f32 %v168_v60, %v164_v6  ;;  %v446_v18 = vadd.f32 %v438_v2, %v430_v9  ;;  %v470_v25 = vld [vmem:[#allocation10 + $0x80] sm:$0xff]  ;;  %v486_v31 = vld [vmem:[#allocation10 + $0x88] sm:$0xff] }
  0x44   :  { %v413_v19 = vadd.f32 %v405_v4, %v397_v10  ;;  %v392_v21 = vld [vmem:[#allocation10 + $0xf8] sm:$0xff]  ;;  %v162_v23 = vadd.f32 %v158_v8, %v154_v12  ;;  %v437_v26 = vld [vmem:[#allocation10 + $0x20] sm:$0xff]  ;;  %v424_v33 = vld [vmem:[#allocation10 + $0x108] sm:$0xff] }
  0x45   :  { %560 = vadd.xlane.f32.xlu1 %v187_v0  ;;  %v185_v16 = vadd.f32 %v181_v54, %v177_v5  ;;  %v400_v27 = vadd.f32 %v392_v21, %v384_v20  ;;  %v180_v28 = vadd.f32 %v176_v7, %v172_v17  ;;  %v182_v29 = vld [vmem:[#allocation5 + $0x98] sm:$0xff]  ;;  %v462_v30 = vadd.f32 %v454_v14, %v446_v18  ;;  %v453_v35 = vld [vmem:[#allocation10 + $0x28] sm:$0xff]  ;;  %v383_v37 = vld [vmem:[#allocation10 + $0xa0] sm:$0xff] }
  0x46   :  { %v429_v32 = vadd.f32 %v421_v15, %v413_v19  ;;  %v170_v34 = vadd.f32 %v166_v13, %v162_v23  ;;  %v391_v38 = vld [vmem:[#allocation10 + $0xa8] sm:$0xff]  ;;  %v502_v41 = vld [vmem:[#allocation10 + $0x90] sm:$0xff]  ;;  %v518_v47 = vld [vmem:[#allocation10 + $0x98] sm:$0xff] }
  0x47   :  { %556 = vadd.xlane.f32.xlu0 %v185_v16  ;;  %v416_v36 = vadd.f32 %v408_v22, %v400_v27  ;;  %v188_v39 = vadd.f32 %v184_v11, %v180_v28  ;;  %v478_v40 = vadd.f32 %v470_v25, %v462_v30  ;;  %v440_v43 = vld [vmem:[#allocation10 + $0x110] sm:$0xff]  ;;  %v399_v44 = vadd.f32 %v391_v38, %v383_v37  ;;  %v423_v50 = vld [vmem:[#allocation10 + $0xb8] sm:$0xff]  ;;  %v439_v59 = vld [vmem:[#allocation10 + $0xc0] sm:$0xff] }
  0x48   :  { %v445_v42 = vadd.f32 %v437_v26, %v429_v32  ;;  %v407_v45 = vld [vmem:[#allocation10 + $0xb0] sm:$0xff]  ;;  %v178_v46 = vadd.f32 %v174_v24, %v170_v34  ;;  %v485_v53 = vld [vmem:[#allocation10 + $0x38] sm:$0xff]  ;;  %v410_v61 = vld [vmem:[#allocation10 + $0x1a0] sm:$0xff] }
  0x49   :  { %v469_v48 = vld [vmem:[#allocation10 + $0x30] sm:$0xff]  ;;  %v432_v49 = vadd.f32 %v424_v33, %v416_v36  ;;  %562 = vadd.xlane.f32.xlu1 %v188_v39  ;;  %v494_v51 = vadd.f32 %v486_v31, %v478_v40  ;;  %v456_v54 = vld [vmem:[#allocation10 + $0x118] sm:$0xff]  ;;  %v415_v55 = vadd.f32 %v407_v45, %v399_v44  ;;  %v501_v0 = vld [vmem:[#allocation10 + $0x40] sm:$0xff] }
  0x4a   :  { %v461_v52 = vadd.f32 %v453_v35, %v445_v42  ;;  %v386_v56 = vld [vmem:[#allocation10 + $0x190] sm:$0xff]  ;;  %v186_v57 = vadd.f32 %v182_v29, %v178_v46  ;;  %v394_v60 = vld [vmem:[#allocation10 + $0x198] sm:$0xff]  ;;  %v472_v1 = vld [vmem:[#allocation10 + $0x120] sm:$0xff] }
  0x4b   :  { %v448_v58 = vadd.f32 %v440_v43, %v432_v49  ;;  %v510_v62 = vadd.f32 %v502_v41, %v494_v51  ;;  %v431_v2 = vadd.f32 %v423_v50, %v415_v55  ;;  %v402_v3 = vadd.f32 %v394_v60, %v386_v56  ;;  %v517_v4 = vld [vmem:[#allocation10 + $0x48] sm:$0xff]  ;;  %v385_v13 = vld [vmem:[#allocation10 + $0x140] sm:$0xff]  ;;  %v409_v15 = vld [vmem:[#allocation10 + $0x150] sm:$0xff] }
  0x4c   :  { %v477_v63 = vadd.f32 %v469_v48, %v461_v52  ;;  %558 = vadd.xlane.f32.xlu0 %v186_v57  ;;  %v488_v6 = vld [vmem:[#allocation10 + $0x128] sm:$0xff]  ;;  %v504_v17 = vld [vmem:[#allocation10 + $0x130] sm:$0xff]  ;;  %v520_v22 = vld [vmem:[#allocation10 + $0x138] sm:$0xff] }
  0x4d   :  { %v464_v5 = vadd.f32 %v456_v54, %v448_v58  ;;  %v455_v7 = vld [vmem:[#allocation10 + $0xc8] sm:$0xff]  ;;  %v526_v9 = vadd.f32 %v518_v47, %v510_v62  ;;  %v447_v11 = vadd.f32 %v439_v59, %v431_v2  ;;  %v418_v12 = vadd.f32 %v410_v61, %v402_v3  ;;  %v471_v18 = vld [vmem:[#allocation10 + $0xd0] sm:$0xff]  ;;  %v487_v24 = vld [vmem:[#allocation10 + $0xd8] sm:$0xff] }
  0x4e   :  { %v426_v8 = vld [vmem:[#allocation10 + $0x1a8] sm:$0xff]  ;;  %v493_v10 = vadd.f32 %v485_v53, %v477_v63  ;;  %v442_v19 = vld [vmem:[#allocation10 + $0x1b0] sm:$0xff]  ;;  %v425_v26 = vld [vmem:[#allocation10 + $0x158] sm:$0xff] }
  0x4f   :  { %v393_v14 = vld [vmem:[#allocation10 + $0x148] sm:$0xff]  ;;  %v480_v16 = vadd.f32 %v472_v1, %v464_v5  ;;  %610 = vadd.xlane.f32.xlu1 %v526_v9  ;;  %v463_v23 = vadd.f32 %v455_v7, %v447_v11  ;;  %v434_v25 = vadd.f32 %v426_v8, %v418_v12  ;;  %v458_v28 = vld [vmem:[#allocation10 + $0x1b8] sm:$0xff]  ;;  %v388_v30 = vld [vmem:[#allocation10 + $0x230] sm:$0xff] }
  0x50   :  { %v401_v20 = vadd.f32 %v393_v14, %v385_v13  ;;  %v509_v21 = vadd.f32 %v501_v0, %v493_v10  ;;  %v396_v31 = vld [vmem:[#allocation10 + $0x238] sm:$0xff]  ;;  %v503_v34 = vld [vmem:[#allocation10 + $0xe0] sm:$0xff]  ;;  %v519_v40 = vld [vmem:[#allocation10 + $0xe8] sm:$0xff] }
  0x51   :  { %v496_v27 = vadd.f32 %v488_v6, %v480_v16  ;;  %v479_v33 = vadd.f32 %v471_v18, %v463_v23  ;;  %v450_v35 = vadd.f32 %v442_v19, %v434_v25  ;;  %v441_v36 = vld [vmem:[#allocation10 + $0x160] sm:$0xff]  ;;  %v404_v37 = vadd.f32 %v396_v31, %v388_v30  ;;  %v428_v43 = vld [vmem:[#allocation10 + $0x248] sm:$0xff]  ;;  %v444_v52 = vld [vmem:[#allocation10 + $0x250] sm:$0xff] }
  0x52   :  { %v417_v29 = vadd.f32 %v409_v15, %v401_v20  ;;  %v525_v32 = vadd.f32 %v517_v4, %v509_v21  ;;  %v412_v38 = vld [vmem:[#allocation10 + $0x240] sm:$0xff]  ;;  %v490_v46 = vld [vmem:[#allocation10 + $0x1c8] sm:$0xff]  ;;  %v411_v54 = vld [vmem:[#allocation10 + $0x1f0] sm:$0xff] }
  0x53   :  { %v512_v39 = vadd.f32 %v504_v17, %v496_v27  ;;  %v474_v41 = vld [vmem:[#allocation10 + $0x1c0] sm:$0xff]  ;;  %v495_v44 = vadd.f32 %v487_v24, %v479_v33  ;;  %v466_v45 = vadd.f32 %v458_v28, %v450_v35  ;;  %v457_v47 = vld [vmem:[#allocation10 + $0x168] sm:$0xff]  ;;  %v420_v48 = vadd.f32 %v412_v38, %v404_v37  ;;  %v506_v57 = vld [vmem:[#allocation10 + $0x1d0] sm:$0xff] }
  0x54   :  { %v433_v42 = vadd.f32 %v425_v26, %v417_v29  ;;  %608 = vadd.xlane.f32.xlu0 %v525_v32  ;;  %v387_v49 = vld [vmem:[#allocation10 + $0x1e0] sm:$0xff]  ;;  %v395_v53 = vld [vmem:[#allocation10 + $0x1e8] sm:$0xff]  ;;  %v473_v58 = vld [vmem:[#allocation10 + $0x170] sm:$0xff] }
  0x55   :  { %v528_v50 = vadd.f32 %v520_v22, %v512_v39  ;;  %v511_v55 = vadd.f32 %v503_v34, %v495_v44  ;;  %v482_v56 = vadd.f32 %v474_v41, %v466_v45  ;;  %v436_v59 = vadd.f32 %v428_v43, %v420_v48  ;;  %v522_v61 = vld [vmem:[#allocation10 + $0x1d8] sm:$0xff]  ;;  %v206_v6 = vld [vmem:[#allocation8 + $0x50] sm:$0xff]  ;;  %v230_v8 = vld [vmem:[#allocation8 + $0x60] sm:$0xff] }
  0x56   :  { %v449_v51 = vadd.f32 %v441_v36, %v433_v42  ;;  %v403_v60 = vadd.f32 %v395_v53, %v387_v49  ;;  %v489_v63 = vld [vmem:[#allocation10 + $0x178] sm:$0xff]  ;;  %v505_v10 = vld [vmem:[#allocation10 + $0x180] sm:$0xff]  ;;  %v521_v15 = vld [vmem:[#allocation10 + $0x188] sm:$0xff] }
  0x57   :  { %614 = vadd.xlane.f32.xlu1 %v528_v50  ;;  %v460_v0 = vld [vmem:[#allocation10 + $0x258] sm:$0xff]  ;;  %v527_v2 = vadd.f32 %v519_v40, %v511_v55  ;;  %v498_v3 = vadd.f32 %v490_v46, %v482_v56  ;;  %v452_v4 = vadd.f32 %v444_v52, %v436_v59  ;;  %v476_v11 = vld [vmem:[#allocation10 + $0x260] sm:$0xff]  ;;  %v492_v17 = vld [vmem:[#allocation10 + $0x268] sm:$0xff] }
  0x58   :  { %v465_v62 = vadd.f32 %v457_v47, %v449_v51  ;;  %v427_v1 = vld [vmem:[#allocation10 + $0x1f8] sm:$0xff]  ;;  %v419_v5 = vadd.f32 %v411_v54, %v403_v60  ;;  %v443_v12 = vld [vmem:[#allocation10 + $0x200] sm:$0xff]  ;;  %v246_v19 = vld [vmem:[#allocation8 + $0x68] sm:$0xff] }
  0x59   :  { %v214_v7 = vld [vmem:[#allocation8 + $0x58] sm:$0xff]  ;;  %612 = vadd.xlane.f32.xlu0 %v527_v2  ;;  %v514_v14 = vadd.f32 %v506_v57, %v498_v3  ;;  %v468_v16 = vadd.f32 %v460_v0, %v452_v4  ;;  %v459_v21 = vld [vmem:[#allocation10 + $0x208] sm:$0xff]  ;;  %v205_v23 = vld [vmem:[#allocation8] sm:$0xff] }
  0x5a   :  { %v481_v9 = vadd.f32 %v473_v58, %v465_v62  ;;  %v222_v13 = vadd.f32 %v214_v7, %v206_v6  ;;  %v435_v18 = vadd.f32 %v427_v1, %v419_v5  ;;  %v213_v24 = vld [vmem:[#allocation8 + $0x8] sm:$0xff]  ;;  %v508_v27 = vld [vmem:[#allocation10 + $0x270] sm:$0xff]  ;;  %v524_v33 = vld [vmem:[#allocation10 + $0x278] sm:$0xff] }
  0x5b   :  { %v530_v25 = vadd.f32 %v522_v61, %v514_v14  ;;  %v484_v26 = vadd.f32 %v476_v11, %v468_v16  ;;  %v262_v29 = vld [vmem:[#allocation8 + $0x70] sm:$0xff]  ;;  %v221_v30 = vadd.f32 %v213_v24, %v205_v23  ;;  %v245_v36 = vld [vmem:[#allocation8 + $0x18] sm:$0xff]  ;;  %v261_v45 = vld [vmem:[#allocation8 + $0x20] sm:$0xff] }
  0x5c   :  { %v497_v20 = vadd.f32 %v489_v63, %v481_v9  ;;  %v238_v22 = vadd.f32 %v230_v8, %v222_v13  ;;  %v451_v28 = vadd.f32 %v443_v12, %v435_v18  ;;  %v229_v31 = vld [vmem:[#allocation8 + $0x10] sm:$0xff]  ;;  %v491_v39 = vld [vmem:[#allocation10 + $0x218] sm:$0xff]  ;;  %v232_v47 = vld [vmem:[#allocation8 + $0x100] sm:$0xff]  ;;  %v1275_v13 = vmov 0.0  }
  0x5d   :  { %v475_v34 = vld [vmem:[#allocation10 + $0x210] sm:$0xff]  ;;  %618 = vadd.xlane.f32.xlu1 %v530_v25  ;;  %v500_v37 = vadd.f32 %v492_v17, %v484_v26  ;;  %v278_v40 = vld [vmem:[#allocation8 + $0x78] sm:$0xff]  ;;  %v237_v41 = vadd.f32 %v229_v31, %v221_v30  ;;  %v507_v50 = vld [vmem:[#allocation10 + $0x220] sm:$0xff]  ;;  %1111 = vmatprep.subr.mxu0 %v1275_v13 }
  0x5e   :  { %v513_v32 = vadd.f32 %v505_v10, %v497_v20  ;;  %v254_v35 = vadd.f32 %v246_v19, %v238_v22  ;;  %v467_v38 = vadd.f32 %v459_v21, %v451_v28  ;;  %v208_v42 = vld [vmem:[#allocation8 + $0xf0] sm:$0xff]  ;;  %v216_v46 = vld [vmem:[#allocation8 + $0xf8] sm:$0xff]  ;;  %v294_v51 = vld [vmem:[#allocation8 + $0x80] sm:$0xff]  ;;  %1113 = vmatprep.mubr.msk.f32.mxu0 %vm1276_vm0, %v1275_v13  ;;  %1116 = vmatprep.subr.mxu1 %v1275_v13 }
  0x5f   :  { %v516_v48 = vadd.f32 %v508_v27, %v500_v37  ;;  %v253_v52 = vadd.f32 %v245_v36, %v237_v41  ;;  %v224_v53 = vadd.f32 %v216_v46, %v208_v42  ;;  %v523_v54 = vld [vmem:[#allocation10 + $0x228] sm:$0xff]  ;;  %v207_v63 = vld [vmem:[#allocation8 + $0xa0] sm:$0xff]  ;;  %v231_v1 = vld [vmem:[#allocation8 + $0xb0] sm:$0xff]  ;;  %1120 = vmatprep.mubr.msk.f32.mxu1 %vm1276_vm0, %v1275_v13 }
  0x60   :  { %v529_v43 = vadd.f32 %v521_v15, %v513_v32  ;;  %v270_v44 = vadd.f32 %v262_v29, %v254_v35  ;;  %v483_v49 = vadd.f32 %v475_v34, %v467_v38  ;;  %v310_v56 = vld [vmem:[#allocation8 + $0x88] sm:$0xff]  ;;  %v326_v3 = vld [vmem:[#allocation8 + $0x90] sm:$0xff]  ;;  %v342_v8 = vld [vmem:[#allocation8 + $0x98] sm:$0xff] }
  0x61   :  { %v277_v57 = vld [vmem:[#allocation8 + $0x28] sm:$0xff]  ;;  %v532_v59 = vadd.f32 %v524_v33, %v516_v48  ;;  %v269_v61 = vadd.f32 %v261_v45, %v253_v52  ;;  %v240_v62 = vadd.f32 %v232_v47, %v224_v53  ;;  %v293_v4 = vld [vmem:[#allocation8 + $0x30] sm:$0xff]  ;;  %v309_v10 = vld [vmem:[#allocation8 + $0x38] sm:$0xff] }
  0x62   :  { %616 = vadd.xlane.f32.xlu0 %v529_v43  ;;  %v286_v55 = vadd.f32 %v278_v40, %v270_v44  ;;  %v248_v58 = vld [vmem:[#allocation8 + $0x108] sm:$0xff]  ;;  %v499_v60 = vadd.f32 %v491_v39, %v483_v49  ;;  %v264_v5 = vld [vmem:[#allocation8 + $0x110] sm:$0xff]  ;;  %v247_v12 = vld [vmem:[#allocation8 + $0xb8] sm:$0xff] }
  0x63   :  { %v215_v0 = vld [vmem:[#allocation8 + $0xa8] sm:$0xff]  ;;  %622 = vadd.xlane.f32.xlu1 %v532_v59  ;;  %v285_v9 = vadd.f32 %v277_v57, %v269_v61  ;;  %v256_v11 = vadd.f32 %v248_v58, %v240_v62  ;;  %v280_v15 = vld [vmem:[#allocation8 + $0x118] sm:$0xff]  ;;  %v210_v17 = vld [vmem:[#allocation8 + $0x190] sm:$0xff] }
  0x64   :  { %v302_v2 = vadd.f32 %v294_v51, %v286_v55  ;;  %v223_v6 = vadd.f32 %v215_v0, %v207_v63  ;;  %v515_v7 = vadd.f32 %v507_v50, %v499_v60  ;;  %v218_v18 = vld [vmem:[#allocation8 + $0x198] sm:$0xff]  ;;  %v325_v21 = vld [vmem:[#allocation8 + $0x40] sm:$0xff]  ;;  %v341_v27 = vld [vmem:[#allocation8 + $0x48] sm:$0xff] }
  0x65   :  { %v301_v20 = vadd.f32 %v293_v4, %v285_v9  ;;  %v272_v22 = vadd.f32 %v264_v5, %v256_v11  ;;  %v263_v23 = vld [vmem:[#allocation8 + $0xc0] sm:$0xff]  ;;  %v226_v24 = vadd.f32 %v218_v18, %v210_v17  ;;  %v250_v30 = vld [vmem:[#allocation8 + $0x1a8] sm:$0xff]  ;;  %v266_v39 = vld [vmem:[#allocation8 + $0x1b0] sm:$0xff] }
  0x66   :  { %v318_v14 = vadd.f32 %v310_v56, %v302_v2  ;;  %v239_v16 = vadd.f32 %v231_v1, %v223_v6  ;;  %v531_v19 = vadd.f32 %v523_v54, %v515_v7  ;;  %v234_v25 = vld [vmem:[#allocation8 + $0x1a0] sm:$0xff]  ;;  %v312_v33 = vld [vmem:[#allocation8 + $0x128] sm:$0xff]  ;;  %v233_v41 = vld [vmem:[#allocation8 + $0x150] sm:$0xff] }
  0x67   :  { %v296_v28 = vld [vmem:[#allocation8 + $0x120] sm:$0xff]  ;;  %v317_v31 = vadd.f32 %v309_v10, %v301_v20  ;;  %v288_v32 = vadd.f32 %v280_v15, %v272_v22  ;;  %v279_v34 = vld [vmem:[#allocation8 + $0xc8] sm:$0xff]  ;;  %v242_v35 = vadd.f32 %v234_v25, %v226_v24  ;;  %v328_v44 = vld [vmem:[#allocation8 + $0x130] sm:$0xff] }
  0x68   :  { %v334_v26 = vadd.f32 %v326_v3, %v318_v14  ;;  %v255_v29 = vadd.f32 %v247_v12, %v239_v16  ;;  %620 = vadd.xlane.f32.xlu0 %v531_v19  ;;  %v209_v36 = vld [vmem:[#allocation8 + $0x140] sm:$0xff]  ;;  %v217_v40 = vld [vmem:[#allocation8 + $0x148] sm:$0xff]  ;;  %v295_v45 = vld [vmem:[#allocation8 + $0xd0] sm:$0xff] }
  0x69   :  { %v333_v42 = vadd.f32 %v325_v21, %v317_v31  ;;  %v304_v43 = vadd.f32 %v296_v28, %v288_v32  ;;  %v258_v46 = vadd.f32 %v250_v30, %v242_v35  ;;  %v225_v47 = vadd.f32 %v217_v40, %v209_v36  ;;  %v311_v49 = vld [vmem:[#allocation8 + $0xd8] sm:$0xff]  ;;  %v212_v56 = vld [vmem:[#allocation8 + $0x230] sm:$0xff]  ;;  %v236_v58 = vld [vmem:[#allocation8 + $0x240] sm:$0xff] }
  0x6a   :  { %v350_v37 = vadd.f32 %v342_v8, %v334_v26  ;;  %v271_v38 = vadd.f32 %v263_v23, %v255_v29  ;;  %v282_v50 = vld [vmem:[#allocation8 + $0x1b8] sm:$0xff]  ;;  %v298_v61 = vld [vmem:[#allocation8 + $0x1c0] sm:$0xff]  ;;  %v314_v3 = vld [vmem:[#allocation8 + $0x1c8] sm:$0xff] }
  0x6b   :  { %v249_v51 = vld [vmem:[#allocation8 + $0x158] sm:$0xff]  ;;  %v349_v52 = vadd.f32 %v341_v27, %v333_v42  ;;  %v320_v53 = vadd.f32 %v312_v33, %v304_v43  ;;  %v274_v54 = vadd.f32 %v266_v39, %v258_v46  ;;  %v241_v55 = vadd.f32 %v233_v41, %v225_v47  ;;  %v265_v62 = vld [vmem:[#allocation8 + $0x160] sm:$0xff]  ;;  %v252_v5 = vld [vmem:[#allocation8 + $0x248] sm:$0xff] }
  0x6c   :  { %578 = vadd.xlane.f32.xlu1 %v350_v37  ;;  %v287_v48 = vadd.f32 %v279_v34, %v271_v38  ;;  %v220_v57 = vld [vmem:[#allocation8 + $0x238] sm:$0xff]  ;;  %v327_v1 = vld [vmem:[#allocation8 + $0xe0] sm:$0xff]  ;;  %v281_v7 = vld [vmem:[#allocation8 + $0x168] sm:$0xff] }
  0x6d   :  { %v344_v59 = vld [vmem:[#allocation8 + $0x138] sm:$0xff]  ;;  %v228_v63 = vadd.f32 %v220_v57, %v212_v56  ;;  %576 = vadd.xlane.f32.xlu0 %v349_v52  ;;  %v336_v0 = vadd.f32 %v328_v44, %v320_v53  ;;  %v290_v2 = vadd.f32 %v282_v50, %v274_v54  ;;  %v257_v4 = vadd.f32 %v249_v51, %v241_v55  ;;  %v211_v9 = vld [vmem:[#allocation8 + $0x1e0] sm:$0xff]  ;;  %v219_v10 = vld [vmem:[#allocation8 + $0x1e8] sm:$0xff] }
  0x6e   :  { %v303_v60 = vadd.f32 %v295_v45, %v287_v48  ;;  %v343_v12 = vld [vmem:[#allocation8 + $0xe8] sm:$0xff]  ;;  %v268_v16 = vld [vmem:[#allocation8 + $0x250] sm:$0xff]  ;;  %v227_v17 = vadd.f32 %v219_v10, %v211_v9  ;;  %v251_v23 = vld [vmem:[#allocation8 + $0x1f8] sm:$0xff] }
  0x6f   :  { %v244_v8 = vadd.f32 %v236_v58, %v228_v63  ;;  %v352_v11 = vadd.f32 %v344_v59, %v336_v0  ;;  %v306_v14 = vadd.f32 %v298_v61, %v290_v2  ;;  %v273_v15 = vadd.f32 %v265_v62, %v257_v4  ;;  %v235_v18 = vld [vmem:[#allocation8 + $0x1f0] sm:$0xff]  ;;  %v284_v26 = vld [vmem:[#allocation8 + $0x258] sm:$0xff]  ;;  %v632_v28 = vld [vmem:[%s1402_s3] sm:$0xff] }
  0x70   :  { %v319_v6 = vadd.f32 %v311_v49, %v303_v60  ;;  %v330_v20 = vld [vmem:[#allocation8 + $0x1d0] sm:$0xff]  ;;  %v243_v27 = vadd.f32 %v235_v18, %v227_v17  ;;  %v346_v30 = vld [vmem:[#allocation8 + $0x1d8] sm:$0xff]  ;;  %v267_v33 = vld [vmem:[#allocation8 + $0x200] sm:$0xff]  ;;  %1112 = vmatpush3.msra.mxu0 %v632_v28 }
  0x71   :  { %v297_v21 = vld [vmem:[#allocation8 + $0x170] sm:$0xff]  ;;  %v260_v22 = vadd.f32 %v252_v5, %v244_v8  ;;  %582 = vadd.xlane.f32.xlu1 %v352_v11  ;;  %v322_v24 = vadd.f32 %v314_v3, %v306_v14  ;;  %v289_v25 = vadd.f32 %v281_v7, %v273_v15  ;;  %v313_v31 = vld [vmem:[#allocation8 + $0x178] sm:$0xff]  ;;  %v300_v36 = vld [vmem:[#allocation8 + $0x260] sm:$0xff]  ;;  %1123 = vmatprep.subr.mxu0 %v1275_v13 }
  0x72   :  { %v335_v19 = vadd.f32 %v327_v1, %v319_v6  ;;  %v259_v37 = vadd.f32 %v251_v23, %v243_v27  ;;  %v329_v38 = vld [vmem:[#allocation8 + $0x180] sm:$0xff]  ;;  %v283_v40 = vld [vmem:[#allocation8 + $0x208] sm:$0xff]  ;;  %v299_v48 = vld [vmem:[#allocation8 + $0x210] sm:$0xff]  ;;  %v644_v1 = vlaneseq }
  0x73   :  { %v276_v32 = vadd.f32 %v268_v16, %v260_v22  ;;  %v338_v34 = vadd.f32 %v330_v20, %v322_v24  ;;  %v305_v35 = vadd.f32 %v297_v21, %v289_v25  ;;  %v316_v43 = vld [vmem:[#allocation8 + $0x268] sm:$0xff]  ;;  %v332_v50 = vld [vmem:[#allocation8 + $0x270] sm:$0xff]  ;;  %v315_v53 = vld [vmem:[#allocation8 + $0x218] sm:$0xff] }
  0x74   :  { %v351_v29 = vadd.f32 %v343_v12, %v335_v19  ;;  %v275_v44 = vadd.f32 %v267_v33, %v259_v37  ;;  %v742_v45 = vld [vmem:[#allocation11 + $0x8] sm:$0xff]  ;;  %v348_v55 = vld [vmem:[#allocation8 + $0x278] sm:$0xff]  ;;  %v331_v58 = vld [vmem:[#allocation8 + $0x220] sm:$0xff]  ;;  %v645_v4 = vand.u32 127, %v644_v1  ;;  %v647_v5 = vshrl.u32 %v644_v1, 7 }
  0x75   :  { %v292_v39 = vadd.f32 %v284_v26, %v276_v32  ;;  %v354_v41 = vadd.f32 %v346_v30, %v338_v34  ;;  %v321_v42 = vadd.f32 %v313_v31, %v305_v35  ;;  %v345_v46 = vld [vmem:[#allocation8 + $0x188] sm:$0xff]  ;;  %1117 = vmatpush3.msra.mxu1 %v742_v45  ;;  %v741_v60 = vld [vmem:[#allocation11] sm:$0xff] }
  0x76   :  { %580 = vadd.xlane.f32.xlu0 %v351_v29  ;;  %v291_v51 = vadd.f32 %v283_v40, %v275_v44  ;;  %1118 = vmatprep.subr.mxu1 %v1275_v13  ;;  %v347_v62 = vld [vmem:[#allocation8 + $0x228] sm:$0xff]  ;;  %v1346_v7 = vsub.s32 %v645_v4, %v647_v5  ;;  %v762_v26 = vadd.s32 4294967288, %v645_v4 }
  0x77   :  { %v308_v47 = vadd.f32 %v300_v36, %v292_v39  ;;  %586 = vadd.xlane.f32.xlu1 %v354_v41  ;;  %v337_v49 = vadd.f32 %v329_v38, %v321_v42  ;;  %1119 = vmatpush3.msra.mxu1 %v741_v60 }
  0x78   :  { %v307_v56 = vadd.f32 %v299_v48, %v291_v51  ;;  %v765_v32 = vsub.s32 %v762_v26, %v647_v5 }
  0x79   :  { %v324_v52 = vadd.f32 %v316_v43, %v308_v47  ;;  %v353_v54 = vadd.f32 %v345_v46, %v337_v49 }
  0x7a   :  { %v323_v59 = vadd.f32 %v315_v53, %v307_v56 }
  0x7b   :  { %v340_v57 = vadd.f32 %v332_v50, %v324_v52  ;;  %584 = vadd.xlane.f32.xlu0 %v353_v54 }
  0x7c   :  { %v339_v63 = vadd.f32 %v331_v58, %v323_v59 }
  0x7d   :  { %v356_v61 = vadd.f32 %v348_v55, %v340_v57 }
  0x7e   :  { %v355_v0 = vadd.f32 %v347_v62, %v339_v63 }
  0x7f   :  { %590 = vadd.xlane.f32.xlu1 %v356_v61 }
  0x80   :  { %588 = vadd.xlane.f32.xlu0 %v355_v0 }
  0xce   :  { %v561_v2 = vpop.xlane.xlu1 %560 }
  0xcf   :  { %v566_v9 = vmul.f32 0.00078125, %v561_v2 }
  0xd0   :  { %v557_v3 = vpop.xlane.xlu0 %556 }
  0xd1   :  { %v564_v8 = vmul.f32 0.00078125, %v557_v3  ;;  %v657_v16 = vrot.slane %v566_v9, %v1346_v7 }
  0xd2   :  { %v563_v6 = vpop.xlane.xlu1 %562 }
  0xd3   :  { %v567_v11 = vmul.f32 0.00078125, %v563_v6  ;;  %v649_v14 = vrot.slane %v564_v8, %v1346_v7 }
  0xd5   :  { %v559_v10 = vpop.xlane.xlu0 %558  ;;  %v661_v17 = vrot.slane %v567_v11, %v1346_v7 }
  0xd6   :  { %v565_v12 = vmul.f32 0.00078125, %v559_v10 }
  0xd8   :  { %v653_v15 = vrot.slane %v565_v12, %v1346_v7  ;;  %v611_v19 = vpop.xlane.xlu1 %610 }
  0xd9   :  { %v625_v33 = vmul.f32 0.00078125, %v611_v19 }
  0xda   :  { %v663_v18 = vsel %vm662_vm1, %v653_v15, %v649_v14 }
  0xdb   :  { %v665_v20 = vsel %vm664_vm2, %v657_v16, %v663_v18  ;;  %v887_v40 = vrot.slane %v625_v33, %v765_v32 }
  0xdc   :  { %v667_v21 = vsel %vm666_vm3, %v661_v17, %v665_v20 }
  0xdd   :  { %v609_v22 = vpop.xlane.xlu0 %608  ;;  %1114 = vmatmul.mubr.msk.f32.vlgmr.msra.gmra.mxu0 %vm668_vm4, %v667_v21 }
  0xde   :  { %1124 = vmatpush3.msra.mxu0 %v742_v45  ;;  %1127 = vmatprep.mubr.msk.f32.mxu0 %vm1276_vm0, %v1275_v13  ;;  %v624_v34 = vmul.f32 0.00078125, %v609_v22  ;;  %v1098_v22 = vld [vmem:[%s1403_s4] ss:$0 sm:$0xff] }
  0xdf   :  { %1125 = vmatprep.subr.mxu0 %v1275_v13 }
  0xe0   :  { %v615_v23 = vpop.xlane.xlu1 %614  ;;  %1126 = vmatpush3.msra.mxu0 %v741_v60  ;;  %v883_v41 = vrot.slane %v624_v34, %v1346_v7 }
  0xe1   :  { %v627_v27 = vmul.f32 0.00078125, %v615_v23 }
  0xe2   :  { %v613_v24 = vpop.xlane.xlu0 %612  ;;  %v888_v47 = vsel %vm767_vm5, %v887_v40, %v883_v41 }
  0xe3   :  { %v626_v28 = vmul.f32 0.00078125, %v613_v24  ;;  %v896_v36 = vrot.slane %v627_v27, %v765_v32  ;;  %v1100_v27 = vld [vmem:[%s1405_s6] ss:$0 sm:$0xff] }
  0xe5   :  { %v892_v37 = vrot.slane %v626_v28, %v1346_v7 }
  0xe6   :  { %v619_v25 = vpop.xlane.xlu1 %618 }
  0xe7   :  { %v629_v30 = vmul.f32 0.00078125, %v619_v25  ;;  %v897_v43 = vsel %vm767_vm5, %v896_v36, %v892_v37 }
  0xe8   :  { %v916_v49 = vsel %vm662_vm1, %v897_v43, %v888_v47 }
  0xe9   :  { %v905_v39 = vrot.slane %v629_v30, %v765_v32 }
  0xeb   :  { %v617_v29 = vpop.xlane.xlu0 %616 }
  0xec   :  { %v628_v31 = vmul.f32 0.00078125, %v617_v29  ;;  %v623_v35 = vpop.xlane.xlu1 %622 }
  0xed   :  { %v631_v38 = vmul.f32 0.00078125, %v623_v35 }
  0xee   :  { %v901_v13 = vrot.slane %v628_v31, %v1346_v7 }
  0xef   :  { %v914_v44 = vrot.slane %v631_v38, %v765_v32 }
  0xf0   :  { %v906_v46 = vsel %vm767_vm5, %v905_v39, %v901_v13 }
  0xf1   :  { %v621_v42 = vpop.xlane.xlu0 %620  ;;  %v917_v52 = vsel %vm664_vm2, %v906_v46, %v916_v49 }
  0xf2   :  { %v630_v45 = vmul.f32 0.00078125, %v621_v42 }
  0xf4   :  { %v910_v48 = vrot.slane %v630_v45, %v1346_v7 }
  0xf5   :  { %v579_v51 = vpop.xlane.xlu1 %578 }
  0xf6   :  { %v915_v50 = vsel %vm767_vm5, %v914_v44, %v910_v48  ;;  %v577_v54 = vpop.xlane.xlu0 %576  ;;  %v593_v58 = vmul.f32 0.00078125, %v579_v51 }
  0xf7   :  { %v918_v53 = vsel %vm666_vm3, %v915_v50, %v917_v52  ;;  %v592_v59 = vmul.f32 0.00078125, %v577_v54 }
  0xf8   :  { %1128 = vmatmul.mubr.msk.f32.vlgmr.msra.gmra.mxu0 %vm799_vm6, %v918_v53  ;;  %v766_v1 = vrot.slane %v593_v58, %v765_v32 }
  0xf9   :  { %v761_v2 = vrot.slane %v592_v59, %v1346_v7 }
  0xfa   :  { %v583_v55 = vpop.xlane.xlu1 %582 }
  0xfb   :  { %v595_v60 = vmul.f32 0.00078125, %v583_v55  ;;  %v768_v11 = vsel %vm767_vm5, %v766_v1, %v761_v2  ;;  %v1016_v2 = vld [vmem:[%s1406_s7] sm:$0xf] }
  0xfd   :  { %v776_v3 = vrot.slane %v595_v60, %v765_v32 }
  0xff   :  { %v581_v56 = vpop.xlane.xlu0 %580 }
 0x100   :  { %v587_v57 = vpop.xlane.xlu1 %586  ;;  %v594_v61 = vmul.f32 0.00078125, %v581_v56 }
 0x101   :  { %v597_v62 = vmul.f32 0.00078125, %v587_v57 }
 0x102   :  { %v772_v4 = vrot.slane %v594_v61, %v1346_v7 }
 0x103   :  { %v785_v6 = vrot.slane %v597_v62, %v765_v32 }
 0x104   :  { %v585_v63 = vpop.xlane.xlu0 %584  ;;  %v777_v12 = vsel %vm767_vm5, %v776_v3, %v772_v4 }
 0x105   :  { %v596_v0 = vmul.f32 0.00078125, %v585_v63  ;;  %v796_v18 = vsel %vm662_vm1, %v777_v12, %v768_v11 }
 0x107   :  { %v781_v8 = vrot.slane %v596_v0, %v1346_v7 }
 0x108   :  { %v591_v5 = vpop.xlane.xlu1 %590 }
 0x109   :  { %v599_v9 = vmul.f32 0.00078125, %v591_v5  ;;  %v589_v10 = vpop.xlane.xlu0 %588  ;;  %v786_v16 = vsel %vm767_vm5, %v785_v6, %v781_v8 }
 0x10a   :  { %v598_v15 = vmul.f32 0.00078125, %v589_v10  ;;  %v797_v20 = vsel %vm664_vm2, %v786_v16, %v796_v18  ;;  %v1060_v10 = vsel %vm1028_vm10, %v1016_v2, 0.0 }
 0x10b   :  { %v794_v14 = vrot.slane %v599_v9, %v765_v32 }
 0x10c   :  { %v790_v17 = vrot.slane %v598_v15, %v1346_v7 }
 0x10e   :  { %v795_v19 = vsel %vm767_vm5, %v794_v14, %v790_v17 }
 0x10f   :  { %v798_v21 = vsel %vm666_vm3, %v795_v19, %v797_v20 }
 0x110   :  { %1121 = vmatmul.mubr.msk.f32.vlgmr.msra.gmra.mxu1 %vm799_vm6, %v798_v21 }
 0x19d   :  { %v737_v23 = vpop.f32.mrf.mxu0 }
 0x19e   :  { %v738_v24 = vadd.f32 %v1098_v22, %v737_v23 }
 0x19f   :  { %v1115_v25 = vpop.f32.mrf.mxu0 }
 0x1a0   :  { %v991_v26 = vmul.f32 %v738_v24, %v738_v24 }
 0x1a2   :  { %v993_v7 = vsel %vm992_vm7, %v991_v26, 0.0 }
 0x1a3   :  { %994 = vadd.xlane.f32.xlu0 %v993_v7 }
 0x1b8   :  { %v987_v28 = vpop.f32.mrf.mxu0 }
 0x1b9   :  { %v988_v29 = vadd.f32 %v1100_v27, %v987_v28 }
 0x1ba   :  { %v1129_v30 = vpop.f32.mrf.mxu0 }
 0x1bb   :  { %v1008_v31 = vmul.f32 %v988_v29, %v988_v29 }
 0x1bd   :  { %v1009_v32 = vsel %vm992_vm7, %v1008_v31, 0.0 }
 0x1be   :  { %1010 = vadd.xlane.f32.xlu1 %v1009_v32 }
 0x1d0   :  { %v868_v33 = vpop.f32.mrf.mxu1 }
 0x1d1   :  { %v869_v34 = vadd.f32 %v1100_v27, %v868_v33 }
 0x1d2   :  { %v1122_v35 = vpop.f32.mrf.mxu1 }
 0x1d3   :  { %v1000_v36 = vmul.f32 %v869_v34, %v869_v34 }
 0x1d5   :  { %v1001_v37 = vsel %vm992_vm7, %v1000_v36, 0.0 }
 0x1d6   :  { %1002 = vadd.xlane.f32.xlu0 %v1001_v37 }
 0x22c   :  { %v995_v38 = vpop.xlane.xlu0 %994 }
 0x22d   :  { %v996_v39 = vmax.f32 %v995_v38, 1e-24 }
 0x22f   :  { %1149 = vrsqrt.f32 %v996_v39 }
 0x23c   :  { %v1150_v41 = vpop.eup %1149 }
 0x23d   :  { %v998_v42 = vmul.f32 %v1150_v41, %v738_v24 }
 0x23f   :  { %v999_v45 = vmul.f32 0.5, %v998_v42 }
 0x247   :  { %v1011_v13 = vpop.xlane.xlu1 %1010 }
 0x248   :  { %v1012_v40 = vmax.f32 %v1011_v13, 1e-24 }
 0x24a   :  { %1151 = vrsqrt.f32 %v1012_v40 }
 0x257   :  { %v1152_v43 = vpop.eup %1151 }
 0x258   :  { %v1014_v44 = vmul.f32 %v1152_v43, %v988_v29 }
 0x25a   :  { %v1015_v46 = vmul.f32 0.5, %v1014_v44 }
 0x25c   :  { %v1022_v47 = vsub.f32 %v999_v45, %v1015_v46 }
 0x25e   :  { %v1023_v48 = vmul.f32 %v1022_v47, %v1022_v47 }
 0x25f   :  { %v1003_v50 = vpop.xlane.xlu0 %1002 }
 0x260   :  { %v1024_v49 = vsel %vm992_vm7, %v1023_v48, 0.0  ;;  %v1004_v51 = vmax.f32 %v1003_v50, 1e-24 }
 0x261   :  { %1025 = vadd.xlane.f32.xlu1 %v1024_v49 }
 0x262   :  { %1153 = vrsqrt.f32 %v1004_v51 }
 0x26f   :  { %v1154_v52 = vpop.eup %1153 }
 0x270   :  { %v1006_v53 = vmul.f32 %v1154_v52, %v869_v34 }
 0x272   :  { %v1007_v54 = vmul.f32 0.5, %v1006_v53 }
 0x274   :  { %v1017_v55 = vsub.f32 %v999_v45, %v1007_v54 }
 0x276   :  { %v1018_v56 = vmul.f32 %v1017_v55, %v1017_v55 }
 0x278   :  { %v1019_v57 = vsel %vm992_vm7, %v1018_v56, 0.0 }
 0x279   :  { %1020 = vadd.xlane.f32.xlu0 %v1019_v57 }
 0x2ea   :  { %v1026_v58 = vpop.xlane.xlu1 %1025 }
 0x2eb   :  { %1155 = vrsqrt.f32 %v1026_v58  ;;  %vm1041_vm8 = vcmp.eq.f32.partialorder %v1026_v58, inf  ;;  %v1044_v61 = vand.u32 2147483648, %v1026_v58  ;;  %vm1043_vm9 = vcmp.eq.f32.partialorder %v1026_v58, 0.0 }
 0x2f8   :  { %v1156_v59 = vpop.eup %1155 }
 0x2f9   :  { %v1040_v60 = vmul.f32 %v1156_v59, %v1026_v58 }
 0x2fb   :  { %v1042_v62 = vsel %vm1041_vm8, %v1026_v58, %v1040_v60 }
 0x2fc   :  { %v1045_v63 = vsel %vm1043_vm9, %v1044_v61, %v1042_v62 }
 0x2fd   :  { %v1046_v0 = vsub.f32 0.99, %v1045_v63 }
 0x2ff   :  { %v1047_v1 = vmax.f32 %v1046_v0, 0.0 }
 0x301   :  { %v1048_v3 = vmul.f32 %v1047_v1, %v1016_v2 }
 0x302   :  { %v1021_v5 = vpop.xlane.xlu0 %1020 }
 0x303   :  { %v1049_v4 = vmul.f32 %v1048_v3, %v1047_v1  ;;  %v1027_v6 = vmul.f32 %v1021_v5, %v1016_v2 }
 0x305   :  { %v1050_v8 = vsel %vm1028_vm10, %v1049_v4, 0.0  ;;  %v1029_v9 = vsel %vm1028_vm10, %v1027_v6, 0.0 }
 0x306   :  { %1051 = vadd.xlane.f32.xlu0 %v1050_v8  ;;  %1030 = vadd.xlane.f32.xlu1 %v1029_v9 }
 0x30a   :  { %1061 = vadd.xlane.f32.xlu1 %v1060_v10 }
 0x38f   :  { %v1052_v11 = vpop.xlane.xlu0 %1051  ;;  %v1031_v14 = vpop.xlane.xlu1 %1030 }
 0x390   :  { %v1053_v12 = vrot.slane %v1052_v11, 4  ;;  %v1032_v15 = vrot.slane %v1031_v14, 4 }
 0x392   :  { %v1054_v16 = vadd.f32 %v1053_v12, %v1052_v11  ;;  %v1033_v17 = vadd.f32 %v1032_v15, %v1031_v14 }
 0x393   :  { %v1062_v19 = vpop.xlane.xlu1 %1061 }
 0x394   :  { %v1055_v18 = vrot.slane %v1054_v16, 2  ;;  %v1034_v20 = vrot.slane %v1033_v17, 2  ;;  %v1063_v21 = vrot.slane %v1062_v19, 4 }
 0x396   :  { %v1056_v22 = vadd.f32 %v1055_v18, %v1054_v16  ;;  %v1064_v23 = vadd.f32 %v1063_v21, %v1062_v19  ;;  %v1035_v24 = vadd.f32 %v1034_v20, %v1033_v17 }
 0x398   :  { %v1057_v25 = vrot.slane %v1056_v22, 1  ;;  %v1065_v26 = vrot.slane %v1064_v23, 2  ;;  %v1036_v7 = vrot.slane %v1035_v24, 1 }
 0x39a   :  { %v1058_v27 = vadd.f32 %v1057_v25, %v1056_v22  ;;  %v1066_v28 = vadd.f32 %v1065_v26, %v1064_v23  ;;  %v1037_v29 = vadd.f32 %v1036_v7, %v1035_v24 }
 0x39c   :  { %1130 = vpush %v1037_v29  ;;  %v1067_v30 = vrot.slane %v1066_v28, 1 }
 0x39d   :  { %1132 = vpush %v1058_v27 }
 0x39e   :  { %v1068_v31 = vadd.f32 %v1067_v30, %v1066_v28 }
 0x3a0   :  { %1134 = vpush %v1068_v31 }
 0x3cd   :  { %s1131_s7 = spop %1130 }
 0x3ce   :  { %s1133_s30 = spop %1132 }
 0x3cf   :  { %s1070_s9 = sadd.f32 %s1133_s30, %s1131_s7 }
 0x3d1   :  { %s1135_s10 = spop %1134 }
 0x3d2   :  { %s1071_s11 = smul.f32 2.0, %s1135_s10 }
 0x3d4   :  { %s1072_s12 = sadd.f32 1e-08, %s1071_s11 }
 0x3d6   :  { %v1073_v32 = vstv %s1072_s12 }
 0x3d7   :  { %1157 = vrcp.f32 %v1073_v32 }
 0x3e4   :  { %v1158_v33 = vpop.eup %1157 }
 0x3e5   :  { %1136 = vpush %v1158_v33 }
 0x416   :  { %s1137_s13 = spop %1136 }
 0x417   :  { %s1076_s14 = smul.f32 %s1137_s13, %s1070_s9 }
 0x419   :  { %s1077_s17 = smul.f32 0.5, %s1076_s14 }
 0x41b   :  { %v1078_v34 = vstv %s1077_s17 }
 0x41c   :  { %1080 = vst.msk [vmem:[#allocation13] sm:$0x1] %vm1079_vm11, %v1078_v34 }
 0x41d   :  { %1250 = shalt.err (!%p1247_p10)
}
 0x41e   :  { %1090 = dma.vmem_to_hbm [thread:$0]  %s1088_s16, 16, %s1407_s8, [#allocation7]  }
 0x41f   :  { %1265 = dma.done.wait [#allocation7], 16  }
 0x420   :  { %1266 = vsyncadd [#allocation7], 4294967280 }
 0x421   :  { %1094 = vsyncpa [#allocation6], 1 }
 0x422   :  { %1095 = vsyncpa [#allocation9], 1 }
 0x423   :  { %1096 = vsyncpa [#allocation12], 1 }
 0x424   :  { %1097 = vsyncpa [#allocation7], 1 }

</bundles_post_ra>
